<compile_context>
chip_gen: v7x
topology: tpu7x:2x2x1
jax: 0.10.0
libtpu: 0.0.40
codegen_flags: <defaults>
</compile_context>

<pallas_src>
import functools

import jax
import jax.numpy as jnp
import numpy as np
from jax.experimental import pallas as pl
from jax.experimental.pallas import tpu as pltpu

N_ANCHOR = 9
REG_OUT = N_ANCHOR * 4      # 36
CLS_OUT = N_ANCHOR * 2      # 18
CLS_ROW0 = 40               # 8-aligned row offset of the cls block in the fused head
FUSED_OUT = 64              # fused head rows: 36 reg | pad | 18 cls | pad


def _round_up(v, m):
    return (v + m - 1) // m * m


def _rpn_kernel(x_ref, w_ref, b_ref, loc_ref, cls_ref,
                patch_ref, left_ref, right_ref, *, H, W):
    """One batch element per grid step.

    x_ref    : (1, Cin, Lp) bf16  flat channel-major input slab (H-padded + shift slack)
    w_ref    : (64, 9*Cin)  bf16  head-folded conv weights, K ordered (kh, kw, Cin)
    b_ref    : (64, 1)      f32   head-folded bias
    loc_ref  : (1, 36, H*W) f32
    cls_ref  : (1, 18, H*W) f32
    patch_ref: (9*Cin, H*W) bf16  scratch: im2col patch (single-matmul operand)
    left_ref : (Cin, Lp)    bf16  scratch: slab with kw=0 wrap positions zeroed
    right_ref: (Cin, Lp)    bf16  scratch: slab with kw=2 wrap positions zeroed
    """
    HW = H * W
    Cin = x_ref.shape[1]
    Lp = x_ref.shape[2]

    # The flat-lane shift wraps across image rows; for the kw=0 / kw=2 taps the
    # wrapped slab positions are exactly pos % W == 0 / pos % W == 1.  Pre-mask
    # the slab ONCE into two scratch copies instead of masking 6 taps.
    slab = x_ref[0]                                               # (Cin, Lp)
    pos = jax.lax.broadcasted_iota(jnp.int32, (1, Lp), 1) % W     # (1, Lp), done once
    zeros = jnp.zeros_like(slab)
    left_ref[...] = jnp.where(pos != 0, slab, zeros)              # source for kw == 0
    right_ref[...] = jnp.where(pos != 1, slab, zeros)             # source for kw == 2

    # im2col: stack the 9 taps along K into the persistent patch scratch.  Each
    # tap is a static lane-offset slice of the (pre-masked) slab; stores land at
    # sublane offsets that are multiples of Cin (bf16 tile-aligned for Cin=96).
    for kh in range(3):
        for kw in range(3):
            t = kh * 3 + kw
            s = kh * W + kw                                       # static lane offset
            if kw == 0:
                tap = left_ref[:, s:s + HW]
            elif kw == 1:
                tap = x_ref[0, :, s:s + HW]
            else:
                tap = right_ref[:, s:s + HW]
            patch_ref[t * Cin:(t + 1) * Cin, :] = tap

    # Single MXU pass: head-folded 3x3 conv (reg | cls fused along output rows),
    # f32 accumulation, bias folded in.
    head = jnp.dot(w_ref[...], patch_ref[...],
                   preferred_element_type=jnp.float32) + b_ref[...]   # (64, HW)

    loc_ref[0] = head[0:REG_OUT].astype(loc_ref.dtype)
    cls_ref[0] = head[CLS_ROW0:CLS_ROW0 + CLS_OUT].astype(cls_ref.dtype)


def _vmem_limit_bytes(Cin, HW, Lp):
    bf, f4 = 2, 4
    blocks = (Cin * Lp * bf                         # input slab block
              + FUSED_OUT * 9 * Cin * bf            # folded weights
              + FUSED_OUT * f4                      # folded bias
              + (REG_OUT + CLS_OUT) * HW * f4)      # output blocks
    scratch = 9 * Cin * HW * bf + 2 * Cin * Lp * bf
    live = Cin * Lp * bf + FUSED_OUT * HW * f4
    est = 2 * blocks + scratch + live + (8 << 20)   # double-buffering + headroom
    cap = None
    try:
        cap = getattr(pltpu.get_tpu_info(), "vmem_capacity_bytes", None)
    except Exception:
        cap = None
    if not cap:
        cap = 64 << 20                              # conservative (v7x-sized) fallback
    # ~3/4 of physical VMEM: ~48 MiB on v7x, ~96 MiB on v5e/v6e.
    return int(min(max(est, 16 << 20), cap * 3 // 4))


def rpn_forward(x_nchw, params):
    """x_nchw: (N, Cin, H, W) f32. Returns (locs (N,36,H,W), labs (N,18,H,W)) f32."""
    w1, b1, wr, br, wc, bc = params
    N, Cin, H, W = x_nchw.shape
    Cmid = w1.shape[0]
    HW = H * W
    # flat length: H*W data + top/bottom H-pad rows + 1 front slack + tail slack
    Lp = _round_up(HW + 2 * W + 2, 128)

    # NCHW is already channel-major: flatten HW (free) + cast + pad (one fused producer).
    x_flat = x_nchw.reshape(N, Cin, HW).astype(jnp.bfloat16)
    xf = jnp.pad(x_flat, ((0, 0), (0, 0), (W + 1, Lp - HW - (W + 1))))

    # ---- Fold the linear reg|cls 1x1 head into conv1 (composed in f32) ----
    hi = jax.lax.Precision.HIGHEST
    wf = jnp.zeros((FUSED_OUT, Cmid), jnp.float32)
    wf = wf.at[0:REG_OUT].set(wr.reshape(REG_OUT, Cmid))
    wf = wf.at[CLS_ROW0:CLS_ROW0 + CLS_OUT].set(wc.reshape(CLS_OUT, Cmid))
    bf_full = jnp.zeros((FUSED_OUT,), jnp.float32)
    bf_full = bf_full.at[0:REG_OUT].set(br)
    bf_full = bf_full.at[CLS_ROW0:CLS_ROW0 + CLS_OUT].set(bc)

    # W_eff[o, kh, kw, c] = sum_m wf[o, m] * w1[m, c, kh, kw]  -> (64, 9*Cin) bf16
    w_eff = jnp.einsum("om,mchw->ohwc", wf, w1.astype(jnp.float32), precision=hi)
    w_eff = w_eff.reshape(FUSED_OUT, 9 * Cin).astype(jnp.bfloat16)
    b_eff = (jnp.einsum("om,m->o", wf, b1.astype(jnp.float32), precision=hi)
             + bf_full).reshape(FUSED_OUT, 1)

    kernel = functools.partial(_rpn_kernel, H=H, W=W)
    out_shape = (jax.ShapeDtypeStruct((N, REG_OUT, HW), jnp.float32),
                 jax.ShapeDtypeStruct((N, CLS_OUT, HW), jnp.float32))

    grid_spec = pltpu.PrefetchScalarGridSpec(
        num_scalar_prefetch=0,
        grid=(N,),
        in_specs=[
            pl.BlockSpec((1, Cin, Lp),            lambda n: (n, 0, 0)),
            pl.BlockSpec((FUSED_OUT, 9 * Cin),    lambda n: (0, 0)),
            pl.BlockSpec((FUSED_OUT, 1),          lambda n: (0, 0)),
        ],
        out_specs=[
            pl.BlockSpec((1, REG_OUT, HW), lambda n: (n, 0, 0)),
            pl.BlockSpec((1, CLS_OUT, HW), lambda n: (n, 0, 0)),
        ],
        scratch_shapes=[
            pltpu.VMEM((9 * Cin, HW), jnp.bfloat16),   # im2col patch
            pltpu.VMEM((Cin, Lp), jnp.bfloat16),       # kw=0 pre-masked slab
            pltpu.VMEM((Cin, Lp), jnp.bfloat16),       # kw=2 pre-masked slab
        ],
    )

    loc, cls = pl.pallas_call(
        kernel,
        out_shape=out_shape,
        grid_spec=grid_spec,
        compiler_params=pltpu.CompilerParams(
            dimension_semantics=("parallel",),
            vmem_limit_bytes=_vmem_limit_bytes(Cin, HW, Lp)),
    )(xf, w_eff, b_eff)

    # (N, Cout, H*W) is already NCHW-ordered; only a free reshape remains.
    return loc.reshape(N, REG_OUT, H, W), cls.reshape(N, CLS_OUT, H, W)


def init_rpn_params(key, in_channels, mid_channels):
    """PyTorch-layout params matching the module init: N(0, 0.01) weights, zero biases."""
    k1, k2, k3 = jax.random.split(key, 3)
    w1 = 0.01 * jax.random.normal(k1, (mid_channels, in_channels, 3, 3), jnp.float32)
    b1 = jnp.zeros((mid_channels,), jnp.float32)
    wr = 0.01 * jax.random.normal(k2, (REG_OUT, mid_channels, 1, 1), jnp.float32)
    br = jnp.zeros((REG_OUT,), jnp.float32)
    wc = 0.01 * jax.random.normal(k3, (CLS_OUT, mid_channels, 1, 1), jnp.float32)
    bc = jnp.zeros((CLS_OUT,), jnp.float32)
    return (w1, b1, wr, br, wc, bc)


def _reference_forward(x_nchw, params):
    """Pure-JAX f32 reference (same math as the PyTorch module)."""
    w1, b1, wr, br, wc, bc = params
    hi = jax.lax.Precision.HIGHEST
    main = jax.lax.conv_general_dilated(
        x_nchw, w1, window_strides=(1, 1), padding=((1, 1), (1, 1)),
        dimension_numbers=("NCHW", "OIHW", "NCHW"),
        precision=hi) + b1[None, :, None, None]
    loc = jnp.einsum("nchw,oc->nohw", main, wr[:, :, 0, 0],
                     precision=hi) + br[None, :, None, None]
    cls = jnp.einsum("nchw,oc->nohw", main, wc[:, :, 0, 0],
                     precision=hi) + bc[None, :, None, None]
    return loc, cls


if __name__ == "__main__":
    # Small shapes consistent with the module defaults:
    # batch=2, in_channels=96, mid_channels=512, spatial 16x16.
    N, Cin, Cmid, H, W = 2, 96, 512, 16, 16

    key = jax.random.PRNGKey(0)
    kx, kp = jax.random.split(key)
    x = jax.random.normal(kx, (N, Cin, H, W), jnp.float32)
    params = init_rpn_params(kp, Cin, Cmid)

    locs, labs = jax.jit(rpn_forward)(x, params)
    jax.block_until_ready((locs, labs))

    assert locs.shape == (N, REG_OUT, H, W), locs.shape
    assert labs.shape == (N, CLS_OUT, H, W), labs.shape

    ref_locs, ref_labs = _reference_forward(x, params)
    # Tolerances sized for the bf16 input/weight path (f32 MXU accumulation,
    # head folding composed in f32).
    np.testing.assert_allclose(np.asarray(locs), np.asarray(ref_locs),
                               rtol=2e-2, atol=1e-2)
    np.testing.assert_allclose(np.asarray(labs), np.asarray(ref_labs),
                               rtol=2e-2, atol=1e-2)

    print("KERNEL_OK")
</pallas_src>

<mosaic_0001>
module attributes {stable_mosaic.version = 11 : i64} {
  func.func @_rpn_kernel(%arg0: i32, %arg1: memref<1x96x384xbf16, #tpu.memory_space<vmem>>, %arg2: memref<64x864xbf16, #tpu.memory_space<vmem>>, %arg3: memref<64x1xf32, #tpu.memory_space<vmem>>, %arg4: memref<1x36x256xf32, #tpu.memory_space<vmem>>, %arg5: memref<1x18x256xf32, #tpu.memory_space<vmem>>, %arg6: memref<864x256xbf16, #tpu.memory_space<vmem>>, %arg7: memref<96x384xbf16, #tpu.memory_space<vmem>>, %arg8: memref<96x384xbf16, #tpu.memory_space<vmem>>) attributes {dimension_semantics = [#tpu.dimension_semantics<parallel>], iteration_bounds = array<i64: 2>, scalar_prefetch = 0 : i64, scratch_operands = 3 : i64, tpu.core_type = #tpu.core_type<tc>, window_params = [{transform_indices = @transform_0, window_bounds = array<i64: 1, 96, 384>}, {pipeline_mode = #tpu.pipeline_mode<synchronous>, transform_indices = @transform_1, window_bounds = array<i64: 64, 864>}, {pipeline_mode = #tpu.pipeline_mode<synchronous>, transform_indices = @transform_2, window_bounds = array<i64: 64, 1>}, {transform_indices = @transform_3, window_bounds = array<i64: 1, 36, 256>}, {transform_indices = @transform_4, window_bounds = array<i64: 1, 18, 256>}]} {
    %c0 = arith.constant 0 : index
    %c0_0 = arith.constant 0 : index
    %c0_1 = arith.constant 0 : index
    %0 = vector.load %arg1[%c0, %c0_0, %c0_1] : memref<1x96x384xbf16, #tpu.memory_space<vmem>>, vector<1x96x384xbf16>
    %1 = vector.shape_cast %0 : vector<1x96x384xbf16> to vector<96x384xbf16>
    %2 = tpu.iota {dimensions = array<i32: 1>} : vector<1x384xi32>
    %c16_i32 = arith.constant 16 : i32
    %c0_i32 = arith.constant 0 : i32
    %3 = arith.cmpi eq, %c16_i32, %c0_i32 : i32
    %c1_i32 = arith.constant 1 : i32
    %4 = arith.select %3, %c1_i32, %c16_i32 : i32
    %5 = vector.broadcast %4 : i32 to vector<1x384xi32>
    %6 = arith.remsi %2, %5 : vector<1x384xi32>
    %c0_i32_2 = arith.constant 0 : i32
    %7 = vector.broadcast %c0_i32_2 : i32 to vector<1x384xi32>
    %8 = arith.cmpi ne, %6, %7 : vector<1x384xi32>
    %c0_i32_3 = arith.constant 0 : i32
    %9 = vector.broadcast %c0_i32_3 : i32 to vector<1x384xi32>
    %10 = arith.cmpi slt, %6, %9 : vector<1x384xi32>
    %c0_i32_4 = arith.constant 0 : i32
    %11 = arith.cmpi slt, %4, %c0_i32_4 : i32
    %12 = vector.broadcast %11 : i1 to vector<1x384xi1>
    %13 = vector.broadcast %12 : vector<1x384xi1> to vector<1x384xi1>
    %14 = arith.xori %10, %13 : vector<1x384xi1>
    %15 = arith.andi %14, %8 : vector<1x384xi1>
    %16 = vector.broadcast %4 : i32 to vector<1x384xi32>
    %17 = arith.addi %6, %16 : vector<1x384xi32>
    %18 = arith.select %15, %17, %6 : vector<1x384xi1>, vector<1x384xi32>
    %cst = arith.constant 0.000000e+00 : bf16
    %19 = vector.broadcast %cst : bf16 to vector<96x384xbf16>
    %c0_i32_5 = arith.constant 0 : i32
    %20 = vector.broadcast %c0_i32_5 : i32 to vector<1x384xi32>
    %21 = arith.cmpi ne, %18, %20 : vector<1x384xi32>
    %22 = vector.shape_cast %21 : vector<1x384xi1> to vector<1x384xi1>
    %23 = vector.broadcast %22 : vector<1x384xi1> to vector<96x384xi1>
    %24 = arith.select %23, %1, %19 : vector<96x384xi1>, vector<96x384xbf16>
    %c0_6 = arith.constant 0 : index
    %c0_7 = arith.constant 0 : index
    %25 = vector.load %arg7[%c0_6, %c0_7] : memref<96x384xbf16, #tpu.memory_space<vmem>>, vector<96x384xbf16>
    tpu.vector_store %arg7[%c0_6, %c0_7], %24 {strides = array<i32>} : memref<96x384xbf16, #tpu.memory_space<vmem>>, vector<96x384xbf16>,
    %c1_i32_8 = arith.constant 1 : i32
    %26 = vector.broadcast %c1_i32_8 : i32 to vector<1x384xi32>
    %27 = arith.cmpi ne, %18, %26 : vector<1x384xi32>
    %28 = vector.shape_cast %27 : vector<1x384xi1> to vector<1x384xi1>
    %29 = vector.broadcast %28 : vector<1x384xi1> to vector<96x384xi1>
    %30 = arith.select %29, %1, %19 : vector<96x384xi1>, vector<96x384xbf16>
    %c0_9 = arith.constant 0 : index
    %c0_10 = arith.constant 0 : index
    %31 = vector.load %arg8[%c0_9, %c0_10] : memref<96x384xbf16, #tpu.memory_space<vmem>>, vector<96x384xbf16>
    tpu.vector_store %arg8[%c0_9, %c0_10], %30 {strides = array<i32>} : memref<96x384xbf16, #tpu.memory_space<vmem>>, vector<96x384xbf16>,
    %c0_11 = arith.constant 0 : index
    %c0_12 = arith.constant 0 : index
    %32 = vector.load %arg7[%c0_11, %c0_12] : memref<96x384xbf16, #tpu.memory_space<vmem>>, vector<96x256xbf16>
    %c0_13 = arith.constant 0 : index
    %c0_14 = arith.constant 0 : index
    %33 = vector.load %arg6[%c0_13, %c0_14] : memref<864x256xbf16, #tpu.memory_space<vmem>>, vector<96x256xbf16>
    tpu.vector_store %arg6[%c0_13, %c0_14], %32 {strides = array<i32>} : memref<864x256xbf16, #tpu.memory_space<vmem>>, vector<96x256xbf16>,
    %c0_15 = arith.constant 0 : index
    %c0_16 = arith.constant 0 : index
    %c1 = arith.constant 1 : index
    %34 = vector.load %arg1[%c0_15, %c0_16, %c1] : memref<1x96x384xbf16, #tpu.memory_space<vmem>>, vector<1x96x256xbf16>
    %35 = vector.shape_cast %34 : vector<1x96x256xbf16> to vector<96x256xbf16>
    %c96 = arith.constant 96 : index
    %c0_17 = arith.constant 0 : index
    %36 = vector.load %arg6[%c96, %c0_17] : memref<864x256xbf16, #tpu.memory_space<vmem>>, vector<96x256xbf16>
    tpu.vector_store %arg6[%c96, %c0_17], %35 {strides = array<i32>} : memref<864x256xbf16, #tpu.memory_space<vmem>>, vector<96x256xbf16>,
    %c0_18 = arith.constant 0 : index
    %c2 = arith.constant 2 : index
    %37 = vector.load %arg8[%c0_18, %c2] : memref<96x384xbf16, #tpu.memory_space<vmem>>, vector<96x256xbf16>
    %c192 = arith.constant 192 : index
    %c0_19 = arith.constant 0 : index
    %38 = vector.load %arg6[%c192, %c0_19] : memref<864x256xbf16, #tpu.memory_space<vmem>>, vector<96x256xbf16>
    tpu.vector_store %arg6[%c192, %c0_19], %37 {strides = array<i32>} : memref<864x256xbf16, #tpu.memory_space<vmem>>, vector<96x256xbf16>,
    %c0_20 = arith.constant 0 : index
    %c16 = arith.constant 16 : index
    %39 = vector.load %arg7[%c0_20, %c16] : memref<96x384xbf16, #tpu.memory_space<vmem>>, vector<96x256xbf16>
    %c288 = arith.constant 288 : index
    %c0_21 = arith.constant 0 : index
    %40 = vector.load %arg6[%c288, %c0_21] : memref<864x256xbf16, #tpu.memory_space<vmem>>, vector<96x256xbf16>
    tpu.vector_store %arg6[%c288, %c0_21], %39 {strides = array<i32>} : memref<864x256xbf16, #tpu.memory_space<vmem>>, vector<96x256xbf16>,
    %c0_22 = arith.constant 0 : index
    %c0_23 = arith.constant 0 : index
    %c17 = arith.constant 17 : index
    %41 = vector.load %arg1[%c0_22, %c0_23, %c17] : memref<1x96x384xbf16, #tpu.memory_space<vmem>>, vector<1x96x256xbf16>
    %42 = vector.shape_cast %41 : vector<1x96x256xbf16> to vector<96x256xbf16>
    %c384 = arith.constant 384 : index
    %c0_24 = arith.constant 0 : index
    %43 = vector.load %arg6[%c384, %c0_24] : memref<864x256xbf16, #tpu.memory_space<vmem>>, vector<96x256xbf16>
    tpu.vector_store %arg6[%c384, %c0_24], %42 {strides = array<i32>} : memref<864x256xbf16, #tpu.memory_space<vmem>>, vector<96x256xbf16>,
    %c0_25 = arith.constant 0 : index
    %c18 = arith.constant 18 : index
    %44 = vector.load %arg8[%c0_25, %c18] : memref<96x384xbf16, #tpu.memory_space<vmem>>, vector<96x256xbf16>
    %c480 = arith.constant 480 : index
    %c0_26 = arith.constant 0 : index
    %45 = vector.load %arg6[%c480, %c0_26] : memref<864x256xbf16, #tpu.memory_space<vmem>>, vector<96x256xbf16>
    tpu.vector_store %arg6[%c480, %c0_26], %44 {strides = array<i32>} : memref<864x256xbf16, #tpu.memory_space<vmem>>, vector<96x256xbf16>,
    %c0_27 = arith.constant 0 : index
    %c32 = arith.constant 32 : index
    %46 = vector.load %arg7[%c0_27, %c32] : memref<96x384xbf16, #tpu.memory_space<vmem>>, vector<96x256xbf16>
    %c576 = arith.constant 576 : index
    %c0_28 = arith.constant 0 : index
    %47 = vector.load %arg6[%c576, %c0_28] : memref<864x256xbf16, #tpu.memory_space<vmem>>, vector<96x256xbf16>
    tpu.vector_store %arg6[%c576, %c0_28], %46 {strides = array<i32>} : memref<864x256xbf16, #tpu.memory_space<vmem>>, vector<96x256xbf16>,
    %c0_29 = arith.constant 0 : index
    %c0_30 = arith.constant 0 : index
    %c33 = arith.constant 33 : index
    %48 = vector.load %arg1[%c0_29, %c0_30, %c33] : memref<1x96x384xbf16, #tpu.memory_space<vmem>>, vector<1x96x256xbf16>
    %49 = vector.shape_cast %48 : vector<1x96x256xbf16> to vector<96x256xbf16>
    %c672 = arith.constant 672 : index
    %c0_31 = arith.constant 0 : index
    %50 = vector.load %arg6[%c672, %c0_31] : memref<864x256xbf16, #tpu.memory_space<vmem>>, vector<96x256xbf16>
    tpu.vector_store %arg6[%c672, %c0_31], %49 {strides = array<i32>} : memref<864x256xbf16, #tpu.memory_space<vmem>>, vector<96x256xbf16>,
    %c0_32 = arith.constant 0 : index
    %c34 = arith.constant 34 : index
    %51 = vector.load %arg8[%c0_32, %c34] : memref<96x384xbf16, #tpu.memory_space<vmem>>, vector<96x256xbf16>
    %c768 = arith.constant 768 : index
    %c0_33 = arith.constant 0 : index
    %52 = vector.load %arg6[%c768, %c0_33] : memref<864x256xbf16, #tpu.memory_space<vmem>>, vector<96x256xbf16>
    tpu.vector_store %arg6[%c768, %c0_33], %51 {strides = array<i32>} : memref<864x256xbf16, #tpu.memory_space<vmem>>, vector<96x256xbf16>,
    %c0_34 = arith.constant 0 : index
    %c0_35 = arith.constant 0 : index
    %53 = vector.load %arg2[%c0_34, %c0_35] : memref<64x864xbf16, #tpu.memory_space<vmem>>, vector<64x864xbf16>
    %c0_36 = arith.constant 0 : index
    %c0_37 = arith.constant 0 : index
    %54 = vector.load %arg6[%c0_36, %c0_37] : memref<864x256xbf16, #tpu.memory_space<vmem>>, vector<864x256xbf16>
    %cst_38 = arith.constant dense<0.000000e+00> : vector<64x256xf32>
    %55 = tpu.matmul %53, %54, %cst_38 {dimension_numbers = #tpu.dot_dimension_numbers<[1], [0], [0], [1], [0, 0, 1, 1], [], []>} : vector<64x864xbf16>, vector<864x256xbf16>, vector<64x256xf32> -> vector<64x256xf32>
    %c0_39 = arith.constant 0 : index
    %c0_40 = arith.constant 0 : index
    %56 = vector.load %arg3[%c0_39, %c0_40] : memref<64x1xf32, #tpu.memory_space<vmem>>, vector<64x1xf32>
    %57 = vector.broadcast %56 : vector<64x1xf32> to vector<64x256xf32>
    %58 = arith.addf %55, %57 : vector<64x256xf32>
    %59 = vector.extract_strided_slice %58 {offsets = [0, 0], sizes = [36, 256], strides = [1, 1]} : vector<64x256xf32> to vector<36x256xf32>
    %c0_41 = arith.constant 0 : index
    %c0_42 = arith.constant 0 : index
    %c0_43 = arith.constant 0 : index
    %60 = vector.load %arg4[%c0_41, %c0_42, %c0_43] : memref<1x36x256xf32, #tpu.memory_space<vmem>>, vector<1x36x256xf32>
    %61 = vector.shape_cast %60 : vector<1x36x256xf32> to vector<36x256xf32>
    %62 = vector.shape_cast %59 : vector<36x256xf32> to vector<1x36x256xf32>
    tpu.vector_store %arg4[%c0_41, %c0_42, %c0_43], %62 {strides = array<i32>} : memref<1x36x256xf32, #tpu.memory_space<vmem>>, vector<1x36x256xf32>,
    %63 = vector.extract_strided_slice %58 {offsets = [40, 0], sizes = [18, 256], strides = [1, 1]} : vector<64x256xf32> to vector<18x256xf32>
    %c0_44 = arith.constant 0 : index
    %c0_45 = arith.constant 0 : index
    %c0_46 = arith.constant 0 : index
    %64 = vector.load %arg5[%c0_44, %c0_45, %c0_46] : memref<1x18x256xf32, #tpu.memory_space<vmem>>, vector<1x18x256xf32>
    %65 = vector.shape_cast %64 : vector<1x18x256xf32> to vector<18x256xf32>
    %66 = vector.shape_cast %63 : vector<18x256xf32> to vector<1x18x256xf32>
    tpu.vector_store %arg5[%c0_44, %c0_45, %c0_46], %66 {strides = array<i32>} : memref<1x18x256xf32, #tpu.memory_space<vmem>>, vector<1x18x256xf32>,
    return
  }
  func.func @transform_0(%arg0: i32) -> (i32, i32, i32) {
    %c0_i32 = arith.constant 0 : i32
    %c0_i32_0 = arith.constant 0 : i32
    %c0_i32_1 = arith.constant 0 : i32
    return %arg0, %c0_i32, %c0_i32_0 : i32, i32, i32
  }
  func.func @transform_1(%arg0: i32) -> (i32, i32) {
    %c0_i32 = arith.constant 0 : i32
    %c0_i32_0 = arith.constant 0 : i32
    %c0_i32_1 = arith.constant 0 : i32
    return %c0_i32, %c0_i32_0 : i32, i32
  }
  func.func @transform_2(%arg0: i32) -> (i32, i32) {
    %c0_i32 = arith.constant 0 : i32
    %c0_i32_0 = arith.constant 0 : i32
    %c0_i32_1 = arith.constant 0 : i32
    return %c0_i32, %c0_i32_0 : i32, i32
  }
  func.func @transform_3(%arg0: i32) -> (i32, i32, i32) {
    %c0_i32 = arith.constant 0 : i32
    %c0_i32_0 = arith.constant 0 : i32
    %c0_i32_1 = arith.constant 0 : i32
    return %arg0, %c0_i32, %c0_i32_0 : i32, i32, i32
  }
  func.func @transform_4(%arg0: i32) -> (i32, i32, i32) {
    %c0_i32 = arith.constant 0 : i32
    %c0_i32_0 = arith.constant 0 : i32
    %c0_i32_1 = arith.constant 0 : i32
    return %arg0, %c0_i32, %c0_i32_0 : i32, i32, i32
  }
}

</mosaic_0001>

<bundles_post_ra>
// kernel: rpn_forward.1
= control target key start
LH: loop header
LB: loop body
LE: loop exit
PB: predicated region body
PF: predicated region fallthrough
CT: control target
= control target key end

     0   :  { %s2735_s15 = smov 0   ;;  %s3555_s0 = inlined_call_operand.vmem [shape: bf16[2,96,384], index: 0, kind: input, shape index: {}]   ;;  %s3556_s1 = inlined_call_operand.vmem [shape: bf16[64,864], index: 1, kind: input, shape index: {}]   ;;  %s3557_s2 = inlined_call_operand.vmem [shape: f32[64,1], index: 2, kind: input, shape index: {}]   ;;  %s3558_s3 = inlined_call_operand.vmem [shape: f32[2,36,256], index: 3, kind: output, shape index: {0}]   ;;  %s3559_s4 = inlined_call_operand.vmem [shape: f32[2,18,256], index: 4, kind: output, shape index: {1}]  }
   0x1 LB: > { %s2405_s16 = sadd.s32 4294967295, %s2699_s15   ;;  %p2409_p0 = scmp.ge.s32.totalorder %s2699_s15, 1  ;;  %s2699_s15 = sphi %s2735_s15, %s15_s15  }
   0x2   : > { %p165_p1 = scmp.lt.s32.totalorder %s2699_s15, 3 }
   0x4   : > { %p166_p2 = pnand %p2409_p0, %p165_p1 }
   0x5   : > { %p196_p3 = scmp.lt.s32.totalorder (!%p166_p2), %s2405_s16, 1  ;;  %v236_v0 = vlaneseq (!%p166_p2)  ;;  %s2701_s21 = smov (!%p166_p2), 127   ;;  %v2652_v48 = vld [vmem:[%s3556_s1 + $0x4] ss:$28 sps:$4 sm:$0xff] (!%p166_p2)   ;;  %vm736_vm10 = vcmask (!%p166_p2), 1039360   ;;  %vm1238_vm11 = vcmask (!%p166_p2), 900096  }
   0x6   : > { %169 = sbr.rel (%p166_p2) target bundleno = 666 (0x29a), region = 32  ;;  %s2702_s22 = smov (!%p166_p2), 110   ;;  %2041 = vmatprep.mubr.bf16.mxu1 (!%p166_p2), %v2652_v48  ;;  %vm845_vm12 = vcmask (!%p166_p2), 1031168   ;;  %vm1347_vm13 = vcmask (!%p166_p2), 785408   ;;  %vm954_vm14 = vcmask (!%p166_p2), 916480   ;;  %vm1522_vm15 = vcmask (!%p166_p2), 777216  }
   0x7   : > { %v237_v1 = vand.u32 (!%p166_p2), 127, %v236_v0  ;;  %s2703_s23 = smov (!%p166_p2), 126   ;;  %s2704_s24 = smov (!%p166_p2), 96  }
   0x8   : > { %s2705_s27 = smov (!%p166_p2), 112   ;;  %s2706_s28 = smov (!%p166_p2), 95  }
   0x9   : > { %v238_v2 = vadd.s32 (!%p166_p2), 128, %v237_v1  ;;  %v244_v8 = vand.u32 (!%p166_p2), 15, %v237_v1  ;;  %v239_v9 = vadd.s32 (!%p166_p2), 256, %v237_v1  ;;  %s2707_s29 = smov (!%p166_p2), 111   ;;  %s2708_s8 = smov (!%p166_p2), 94  }
   0xb   : > { %v251_v11 = vand.u32 (!%p166_p2), 15, %v238_v2  ;;  %vm425_vm0 = vcmp.ne.s32.totalorder (!%p166_p2), %v244_v8, 1  ;;  %v258_v15 = vand.u32 (!%p166_p2), 15, %v239_v9  ;;  %vm276_vm2 = vcmp.ne.s32.totalorder (!%p166_p2), %v244_v8, 0 }
   0xd   : > { %s3571_s16 = smov (!%p196_p3, %s2405_s16), 1  ;;  %vm426_vm1 = vcmp.ne.s32.totalorder %v251_v11, 1  ;;  %vm277_vm3 = vcmp.ne.s32.totalorder %v251_v11, 0  ;;  %vm427_vm5 = vcmp.ne.s32.totalorder %v258_v15, 1  ;;  %vm2826_vm8 = vcmp.ne.s32.totalorder %v258_v15, 0 }
   0xe   : > { %s2601_s17 = smul.u32 144, %s3571_s16  ;;  %vm2782_vm4 = vmpackc.low %vm426_vm1, %vm425_vm0  ;;  %vm1129_vm0 = vcmask 908288   ;;  %vm1631_vm1 = vcmask 769024  }
   0xf   : > { %vm2786_vm6 = vmpackc.low %vm277_vm3, %vm276_vm2  ;;  %s2603_s7 = smul.u32 48, %s3571_s16 }
  0x10   : > { %s2749_s20 = scalar_lea.vmem %s3555_s0, %s2601_s17  ;;  %vm2802_vm7 = vmpackc.low %vm427_vm5, %vm427_vm5 }
  0x11   : > { %v2752_v3 = vld [vmem:[%s2749_s20] sm:$0xff]  ;;  %v2755_v4 = vld [vmem:[%s2749_s20 + $0xc] sm:$0xff]  ;;  %v602_v7 = vld [vmem:[%s2749_s20 + $0x18] sm:$0xff]  ;;  %s210_s10 = scalar_lea.vmem %s3559_s4, %s2603_s7 }
  0x12   : > { %v2759_v5 = vcombine.high %v2752_v3, %v2755_v4  ;;  %v2763_v6 = vcombine.low %v2752_v3, %v2755_v4  ;;  %v604_v10 = vld [vmem:[%s2749_s20 + $0x24] sm:$0xff]  ;;  %v2627_v14 = vld [vmem:[%s2749_s20 + $0x20] ss:$12 sps:$4 sm:$0xff]   ;;  %v606_v17 = vld [vmem:[%s2749_s20 + $0x30] sm:$0xff]  ;;  %v287_v28 = vsel %vm2786_vm6, %v2752_v3, 0  ;;  %v289_v29 = vsel %vm2786_vm6, %v2755_v4, 0 }
  0x13   : > { %v2625_v12 = vld [vmem:[%s2749_s20 + $0x8] ss:$12 sps:$4 sm:$0xff]   ;;  %v2772_v13 = vcombine.high %v602_v7, %v604_v10  ;;  %v2778_v16 = vcombine.low %v602_v7, %v604_v10  ;;  %v608_v18 = vld [vmem:[%s2749_s20 + $0x3c] sm:$0xff]  ;;  %v2630_v22 = vld [vmem:[%s2749_s20 + $0x38] ss:$12 sps:$4 sm:$0xff]   ;;  %v444_v23 = vsel %vm2782_vm4, %v606_v17, 0  ;;  %v2823_v34 = vcombine.high %v287_v28, %v289_v29 }
  0x14   : > { %702 = vrot.lane.b32.xlu0 %v2759_v5, %s2701_s21  ;;  %700 = vrot.lane.b32.xlu1 %v2763_v6, %s2701_s21  ;;  %v2793_v21 = vcombine.high %v606_v17, %v608_v18  ;;  %v446_v24 = vsel %vm2782_vm4, %v608_v18, 0  ;;  %v221_v25 = vld [vmem:[%s2749_s20 + $0x38] sm:$0xf]  ;;  %v223_v26 = vld [vmem:[%s2749_s20 + $0x44] sm:$0xf]  ;;  %v2815_v30 = vcombine.low %v606_v17, %v608_v18  ;;  %v2833_v39 = vcombine.low %v287_v28, %v289_v29  ;;  %vm2858_vm9 = vmpackc.low %vm2826_vm8, %vm2826_vm8 }
  0x15   : > { %v2817_v31 = vcombine.high %v444_v23, %v446_v24  ;;  %v445_v32 = vsel %vm2802_vm7, %v221_v25, 0  ;;  %v447_v33 = vsel %vm2802_vm7, %v223_v26, 0  ;;  %v610_v35 = vld [vmem:[%s2749_s20 + $0x48] sm:$0xff]  ;;  %v2830_v37 = vcombine.low %v444_v23, %v446_v24  ;;  %v612_v38 = vld [vmem:[%s2749_s20 + $0x54] sm:$0xff]  ;;  %2009 = vmatprep.subr.bf16.mxu1 %v2823_v34  ;;  %v225_v43 = vld [vmem:[%s2749_s20 + $0x50] sm:$0xf] }
  0x16   : > { %v440_v40 = vsel %vm2782_vm4, %v602_v7, 0  ;;  %v442_v41 = vsel %vm2782_vm4, %v604_v10, 0  ;;  %v2844_v42 = vcombine.low %v445_v32, %v447_v33  ;;  %v291_v46 = vsel %vm2786_vm6, %v602_v7, 0  ;;  %2010 = vmatpush1.bf16.msra.mxu1 %v2833_v39  ;;  %v2633_v51 = vld [vmem:[%s2749_s20 + $0x50] ss:$12 sps:$4 sm:$0xff]   ;;  %v614_v61 = vld [vmem:[%s2749_s20 + $0x60] sm:$0xff] }
  0x17   : > { %v2847_v44 = vcombine.high %v440_v40, %v442_v41  ;;  %v2849_v45 = vcombine.low %v440_v40, %v442_v41  ;;  %v448_v47 = vsel %vm2782_vm4, %v610_v35, 0  ;;  %v293_v49 = vsel %vm2786_vm6, %v604_v10, 0  ;;  %v227_v52 = vld [vmem:[%s2749_s20 + $0x5c] sm:$0xf]  ;;  %v2872_v54 = vld [vmem:[%s2749_s20 + $0x68] sm:$0xf] }
  0x18   : > { %704 = vrot.lane.b32.xlu0 %v2625_v12, %s2701_s21  ;;  %708 = vrot.lane.b32.xlu1 %v2772_v13, %s2701_s21  ;;  %v2865_v50 = vcombine.high %v610_v35, %v612_v38  ;;  %v295_v53 = vsel %vm2786_vm6, %v606_v17, 0  ;;  %v2874_v55 = vcombine.high %v291_v46, %v293_v49  ;;  %v297_v56 = vsel %vm2786_vm6, %v608_v18, 0  ;;  %v2892_v62 = vld [vmem:[%s2749_s20 + $0x74] sm:$0xf]  ;;  %v616_v2 = vld [vmem:[%s2749_s20 + $0x6c] sm:$0xff] }
  0x19   : > { %v296_v57 = vsel %vm2858_vm9, %v221_v25, 0  ;;  %v298_v58 = vsel %vm2858_vm9, %v223_v26, 0  ;;  %v450_v59 = vsel %vm2782_vm4, %v612_v38, 0  ;;  %v449_v60 = vsel %vm2802_vm7, %v225_v43, 0  ;;  %v2902_v7 = vld [vmem:[%s2749_s20 + $0x80] sm:$0xf] }
  0x1a   : > { %v2894_v63 = vcombine.low %v291_v46, %v293_v49  ;;  %v2896_v0 = vcombine.low %v296_v57, %v298_v58  ;;  %v2898_v1 = vcombine.low %v610_v35, %v612_v38  ;;  %v2904_v8 = vcombine.high %v295_v53, %v297_v56  ;;  %2011 = vmatprep.subr.bf16.mxu1 %v2874_v55  ;;  %v2912_v11 = vld [vmem:[%s2749_s20 + $0x8c] sm:$0xf]  ;;  %v618_v33 = vld [vmem:[%s2749_s20 + $0x78] sm:$0xff] }
  0x1b   : > { %v300_v9 = vsel %vm2858_vm9, %v225_v43, 0  ;;  %v302_v10 = vsel %vm2858_vm9, %v227_v52, 0  ;;  %v299_v12 = vsel %vm2786_vm6, %v610_v35, 0  ;;  %v304_v17 = vsel %vm2858_vm9, %v2872_v54, 0  ;;  %v620_v35 = vld [vmem:[%s2749_s20 + $0x84] sm:$0xff] }
  0x1c   : > { %710 = vrot.lane.b32.xlu0 %v2627_v14, %s2701_s21  ;;  %706 = vrot.lane.b32.xlu1 %v2778_v16, %s2701_s21  ;;  %v301_v14 = vsel %vm2786_vm6, %v612_v38, 0  ;;  %v2919_v15 = vcombine.low %v300_v9, %v302_v10  ;;  %v2924_v18 = vcombine.high %v448_v47, %v450_v59  ;;  %v303_v23 = vsel %vm2786_vm6, %v614_v61, 0 }
  0x1d   : > { %2012 = vmatpush1.bf16.msra.mxu1 %v2894_v63  ;;  %v306_v24 = vsel %vm2858_vm9, %v2892_v62, 0  ;;  %v305_v25 = vsel %vm2786_vm6, %v616_v2, 0  ;;  %v308_v28 = vsel %vm2858_vm9, %v2902_v7, 0  ;;  %v310_v29 = vsel %vm2858_vm9, %v2912_v11, 0 }
  0x1e   : > { %2013 = vmatprep.subr.bf16.mxu1 %v2904_v8  ;;  %v2939_v26 = vcombine.low %v304_v17, %v306_v24  ;;  %v451_v32 = vsel %vm2802_vm7, %v227_v52, 0  ;;  %v2951_v36 = vcombine.high %v299_v12, %v301_v14  ;;  %v2953_v38 = vcombine.low %v308_v28, %v310_v29  ;;  %v213_v28 = vld [vmem:[%s2749_s20 + $0x8] sm:$0xf]  ;;  %v215_v29 = vld [vmem:[%s2749_s20 + $0x14] sm:$0xf] }
  0x1f   : > { %v2956_v40 = vcombine.low %v448_v47, %v450_v59  ;;  %v2959_v41 = vcombine.high %v303_v23, %v305_v25  ;;  %v2965_v43 = vcombine.low %v449_v60, %v451_v32  ;;  %v2967_v46 = vcombine.low %v299_v12, %v301_v14 }
  0x20   : > { %714 = vrot.lane.b32.xlu0 %v2793_v21, %s2701_s21  ;;  %716 = vrot.lane.b32.xlu1 %v2630_v22, %s2701_s21  ;;  %v2926_v22 = vcombine.low %v295_v53, %v297_v56  ;;  %v307_v49 = vsel %vm2786_vm6, %v618_v33, 0  ;;  %v309_v47 = vsel %vm2786_vm6, %v620_v35, 0  ;;  %v2983_v53 = vcombine.high %v614_v61, %v616_v2  ;;  %v2636_v56 = vld [vmem:[%s2749_s20 + $0x68] ss:$12 sps:$4 sm:$0xff]  }
  0x21   : > { %v2977_v52 = vcombine.high %v307_v49, %v309_v47  ;;  %v452_v20 = vsel %vm2782_vm4, %v614_v61, 0  ;;  %v454_v57 = vsel %vm2782_vm4, %v616_v2, 0  ;;  %v2991_v58 = vcombine.low %v307_v49, %v309_v47 }
  0x22   : > { %2014 = vmatpush1.bf16.msra.mxu1 %v2926_v22  ;;  %v2997_v59 = vcombine.low %v614_v61, %v616_v2  ;;  %v2999_v60 = vcombine.high %v452_v20, %v454_v57  ;;  %v453_v9 = vsel %vm2802_vm7, %v2872_v54, 0  ;;  %v455_v10 = vsel %vm2802_vm7, %v2892_v62, 0  ;;  %v2639_v62 = vld [vmem:[%s2749_s20 + $0x80] ss:$12 sps:$4 sm:$0xff]  }
  0x23   : > { %2015 = vmatprep.subr.bf16.mxu1 %v2951_v36  ;;  %v3012_v61 = vcombine.low %v453_v9, %v455_v10  ;;  %v3014_v2 = vcombine.low %v452_v20, %v454_v57  ;;  %v3020_v54 = vcombine.high %v618_v33, %v620_v35  ;;  %v456_v12 = vsel %vm2782_vm4, %v618_v33, 0  ;;  %v217_v20 = vld [vmem:[%s2749_s20 + $0x20] sm:$0xf]  ;;  %v219_v57 = vld [vmem:[%s2749_s20 + $0x2c] sm:$0xf] }
  0x24   : > { %712 = vrot.lane.b32.xlu0 %v2815_v30, %s2701_s21  ;;  %1216 = vrot.lane.b32.xlu1 %v2817_v31, %s2702_s22  ;;  %v458_v14 = vsel %vm2782_vm4, %v620_v35, 0  ;;  %v3030_v17 = vcombine.low %v618_v33, %v620_v35  ;;  %v457_v24 = vsel %vm2802_vm7, %v2902_v7, 0  ;;  %v437_v7 = vsel %vm2802_vm7, %v213_v28, 0 }
  0x25   : > { %v3048_v33 = vcombine.low %v456_v12, %v458_v14  ;;  %v436_v35 = vsel %vm2782_vm4, %v2752_v3, 0  ;;  %v438_v49 = vsel %vm2782_vm4, %v2755_v4, 0  ;;  %v288_v4 = vsel %vm2858_vm9, %v213_v28, 0 }
  0x26   : > { %2016 = vmatpush1.bf16.msra.mxu1 %v2967_v46  ;;  %v3072_v3 = vcombine.low %v436_v35, %v438_v49  ;;  %v290_v19 = vsel %vm2858_vm9, %v215_v29, 0  ;;  %v441_v10 = vsel %vm2802_vm7, %v217_v20, 0  ;;  %v294_v27 = vsel %vm2858_vm9, %v219_v57, 0 }
  0x27   : > { %2017 = vmatprep.subr.bf16.mxu1 %v2959_v41  ;;  %v3084_v9 = vcombine.low %v288_v4, %v290_v19 }
  0x28   : > { %1218 = vrot.lane.b32.xlu0 %v2844_v42, %s2702_s22  ;;  %1214 = vrot.lane.b32.xlu1 %v2830_v37, %s2702_s22 }
  0x2c   : > { %720 = vrot.lane.b32.xlu0 %v2865_v50, %s2701_s21  ;;  %722 = vrot.lane.b32.xlu1 %v2633_v51, %s2701_s21  ;;  %v2974_v51 = vcombine.low %v303_v23, %v305_v25  ;;  %v3032_v23 = vcombine.high %v456_v12, %v458_v14  ;;  %v459_v25 = vsel %vm2802_vm7, %v2912_v11, 0  ;;  %v439_v11 = vsel %vm2802_vm7, %v215_v29, 0 }
  0x2d   : > { %v3046_v32 = vcombine.low %v457_v24, %v459_v25  ;;  %v3064_v47 = vcombine.low %v437_v7, %v439_v11  ;;  %v292_v14 = vsel %vm2858_vm9, %v217_v20, 0 }
  0x2e   : > { %2018 = vmatpush1.bf16.msra.mxu1 %v2974_v51  ;;  %v3108_v24 = vcombine.low %v292_v14, %v294_v27 }
  0x2f   : > { %2019 = vmatprep.subr.bf16.mxu1 %v2977_v52 }
  0x30   : > { %718 = vrot.lane.b32.xlu0 %v2898_v1, %s2701_s21  ;;  %1222 = vrot.lane.b32.xlu1 %v2924_v18, %s2702_s22 }
  0x32   : > { %2020 = vmatpush1.bf16.msra.mxu1 %v2991_v58 }
  0x34   : > { %1224 = vrot.lane.b32.xlu0 %v2965_v43, %s2702_s22  ;;  %1220 = vrot.lane.b32.xlu1 %v2956_v40, %s2702_s22 }
  0x38   : > { %726 = vrot.lane.b32.xlu0 %v2983_v53, %s2701_s21  ;;  %728 = vrot.lane.b32.xlu1 %v2636_v56, %s2701_s21  ;;  %v3066_v56 = vcombine.high %v436_v35, %v438_v49 }
  0x3c   : > { %724 = vrot.lane.b32.xlu0 %v2997_v59, %s2701_s21  ;;  %1228 = vrot.lane.b32.xlu1 %v2999_v60, %s2702_s22 }
  0x40   : > { %1230 = vrot.lane.b32.xlu0 %v3012_v61, %s2702_s22  ;;  %1226 = vrot.lane.b32.xlu1 %v3014_v2, %s2702_s22 }
  0x44   : > { %732 = vrot.lane.b32.xlu0 %v3020_v54, %s2701_s21  ;;  %734 = vrot.lane.b32.xlu1 %v2639_v62, %s2701_s21  ;;  %v443_v62 = vsel %vm2802_vm7, %v219_v57, 0 }
  0x45   : > { %v3094_v12 = vcombine.low %v441_v10, %v443_v62 }
  0x48   : > { %730 = vrot.lane.b32.xlu0 %v3030_v17, %s2701_s21  ;;  %1234 = vrot.lane.b32.xlu1 %v3032_v23, %s2702_s22 }
  0x4c   : > { %1236 = vrot.lane.b32.xlu0 %v3046_v32, %s2702_s22  ;;  %1232 = vrot.lane.b32.xlu1 %v3048_v33, %s2702_s22 }
  0x50   : > { %813 = vrot.lane.b32.xlu1 %v3064_v47, %s2703_s23  ;;  %811 = vrot.lane.b32.xlu0 %v3066_v56, %s2703_s23 }
  0x54   : > { %809 = vrot.lane.b32.xlu0 %v3072_v3, %s2703_s23  ;;  %1313 = vrot.lane.b32.xlu1 %v2823_v34, %s2704_s24 }
  0x58   : > { %1315 = vrot.lane.b32.xlu0 %v3084_v9, %s2704_s24  ;;  %1311 = vrot.lane.b32.xlu1 %v2833_v39, %s2704_s24 }
  0x5c   : > { %817 = vrot.lane.b32.xlu0 %v2847_v44, %s2703_s23  ;;  %819 = vrot.lane.b32.xlu1 %v3094_v12, %s2703_s23 }
  0x60   : > { %815 = vrot.lane.b32.xlu0 %v2849_v45, %s2703_s23  ;;  %1319 = vrot.lane.b32.xlu1 %v2874_v55, %s2704_s24 }
  0x64   : > { %1321 = vrot.lane.b32.xlu0 %v3108_v24, %s2704_s24  ;;  %1317 = vrot.lane.b32.xlu1 %v2894_v63, %s2704_s24 }
  0x68   : > { %823 = vrot.lane.b32.xlu0 %v2817_v31, %s2703_s23  ;;  %825 = vrot.lane.b32.xlu1 %v2844_v42, %s2703_s23 }
  0x6c   : > { %821 = vrot.lane.b32.xlu0 %v2830_v37, %s2703_s23  ;;  %1325 = vrot.lane.b32.xlu1 %v2904_v8, %s2704_s24 }
  0x70   : > { %1327 = vrot.lane.b32.xlu0 %v2896_v0, %s2704_s24  ;;  %1323 = vrot.lane.b32.xlu1 %v2926_v22, %s2704_s24 }
  0x74   : > { %829 = vrot.lane.b32.xlu0 %v2924_v18, %s2703_s23  ;;  %831 = vrot.lane.b32.xlu1 %v2965_v43, %s2703_s23 }
  0x78   : > { %827 = vrot.lane.b32.xlu0 %v2956_v40, %s2703_s23  ;;  %1331 = vrot.lane.b32.xlu1 %v2951_v36, %s2704_s24 }
  0x7c   : > { %1333 = vrot.lane.b32.xlu0 %v2919_v15, %s2704_s24  ;;  %1329 = vrot.lane.b32.xlu1 %v2967_v46, %s2704_s24 }
  0x80   : > { %835 = vrot.lane.b32.xlu0 %v2999_v60, %s2703_s23  ;;  %837 = vrot.lane.b32.xlu1 %v3012_v61, %s2703_s23 }
  0x84   : > { %833 = vrot.lane.b32.xlu0 %v3014_v2, %s2703_s23  ;;  %1337 = vrot.lane.b32.xlu1 %v2959_v41, %s2704_s24 }
  0x86   : > { %v703_v25 = vpop.permute.xlu0 %702  ;;  %v701_v28 = vpop.permute.xlu1 %700 }
  0x87   : > { %v737_v35 = vsel %vm736_vm10, %v701_v28, %v703_v25 }
  0x88   : > { %1339 = vrot.lane.b32.xlu0 %v2939_v26, %s2704_s24  ;;  %1335 = vrot.lane.b32.xlu1 %v2974_v51, %s2704_s24 }
  0x8a   : > { %v705_v29 = vpop.permute.xlu0 %704  ;;  %v709_v7 = vpop.permute.xlu1 %708 }
  0x8b   : > { %v738_v11 = vsel %vm736_vm10, %v703_v25, %v705_v29 }
  0x8c   : > { %841 = vrot.lane.b32.xlu0 %v3032_v23, %s2703_s23  ;;  %843 = vrot.lane.b32.xlu1 %v3046_v32, %s2703_s23 }
  0x8d   : > { %2021 = vmatprep.subr.bf16.mxu1 %v738_v11  ;;  %v2641_v11 = vld [vmem:[%s2749_s20 + $0x8] ss:$12 sps:$4 sm:$0xff]  }
  0x8e   : > { %2022 = vmatpush1.bf16.msra.mxu1 %v737_v35  ;;  %v711_v49 = vpop.permute.xlu0 %710  ;;  %v707_v4 = vpop.permute.xlu1 %706 }
  0x8f   : > { %v740_v19 = vsel %vm736_vm10, %v709_v7, %v711_v49  ;;  %v739_v20 = vsel %vm736_vm10, %v707_v4, %v709_v7 }
  0x90   : > { %839 = vrot.lane.b32.xlu0 %v3048_v33, %s2703_s23  ;;  %1343 = vrot.lane.b32.xlu1 %v2977_v52, %s2704_s24 }
  0x91   : > { %2023 = vmatprep.subr.bf16.mxu1 %v740_v19 }
  0x92   : > { %2024 = vmatpush1.bf16.msra.mxu1 %v739_v20  ;;  %v715_v57 = vpop.permute.xlu0 %714  ;;  %v717_v10 = vpop.permute.xlu1 %716 }
  0x93   : > { %v742_v62 = vsel %vm736_vm10, %v715_v57, %v717_v10 }
  0x94   : > { %1345 = vrot.lane.b32.xlu0 %v2953_v38, %s2704_s24  ;;  %1341 = vrot.lane.b32.xlu1 %v2991_v58, %s2704_s24 }
  0x95   : > { %2025 = vmatprep.subr.bf16.mxu1 %v742_v62  ;;  %v2642_v62 = vld [vmem:[%s2749_s20 + $0x20] ss:$12 sps:$4 sm:$0xff]  }
  0x96   : > { %v713_v14 = vpop.permute.xlu0 %712  ;;  %v1217_v27 = vpop.permute.xlu1 %1216 }
  0x97   : > { %v741_v48 = vsel %vm736_vm10, %v713_v14, %v715_v57 }
  0x98   : > { %920 = vrot.lane.b32.xlu0 %v2823_v34, %s2705_s27  ;;  %922 = vrot.lane.b32.xlu1 %v3084_v9, %s2705_s27 }
  0x99   : > { %2026 = vmatpush1.bf16.msra.mxu1 %v741_v48 }
  0x9a   : > { %v1219_v25 = vpop.permute.xlu0 %1218  ;;  %v1215_v28 = vpop.permute.xlu1 %1214 }
  0x9b   : > { %v1244_v29 = vsel %vm1238_vm11, %v1217_v27, %v1219_v25  ;;  %v1243_v7 = vsel %vm1238_vm11, %v1215_v28, %v1217_v27 }
  0x9c   : > { %2155 = vmatprep.subr.bf16.mxu0 %v1244_v29  ;;  %918 = vrot.lane.b32.xlu0 %v2833_v39, %s2705_s27 }
  0x9d   : > { %1488 = vrot.lane.b32.xlu1 %v2759_v5, %s2706_s28  ;;  %2156 = vmatpush1.bf16.msra.mxu0 %v1243_v7 }
  0x9e   : > { %v721_v34 = vpop.permute.xlu0 %720  ;;  %v723_v9 = vpop.permute.xlu1 %722 }
  0x9f   : > { %v744_v35 = vsel %vm736_vm10, %v721_v34, %v723_v9 }
  0xa0   : > { %1490 = vrot.lane.b32.xlu0 %v2641_v11, %s2706_s28  ;;  %2027 = vmatprep.subr.bf16.mxu1 %v744_v35  ;;  %v2643_v11 = vld [vmem:[%s2749_s20 + $0x38] ss:$12 sps:$4 sm:$0xff]  }
  0xa1   : > { %1486 = vrot.lane.b32.xlu1 %v2763_v6, %s2706_s28 }
  0xa2   : > { %v719_v49 = vpop.permute.xlu0 %718  ;;  %v1223_v4 = vpop.permute.xlu1 %1222 }
  0xa3   : > { %v743_v39 = vsel %vm736_vm10, %v719_v49, %v721_v34 }
  0xa4   : > { %926 = vrot.lane.b32.xlu0 %v2874_v55, %s2705_s27  ;;  %2028 = vmatpush1.bf16.msra.mxu1 %v743_v39 }
  0xa5   : > { %928 = vrot.lane.b32.xlu1 %v3108_v24, %s2705_s27 }
  0xa6   : > { %v1225_v19 = vpop.permute.xlu0 %1224  ;;  %v1221_v20 = vpop.permute.xlu1 %1220 }
  0xa7   : > { %v1246_v57 = vsel %vm1238_vm11, %v1223_v4, %v1225_v19  ;;  %v1245_v10 = vsel %vm1238_vm11, %v1221_v20, %v1223_v4  ;;  %v2644_v20 = vld [vmem:[%s2749_s20 + $0x50] ss:$12 sps:$4 sm:$0xff]  }
  0xa8   : > { %2157 = vmatprep.subr.bf16.mxu0 %v1246_v57  ;;  %924 = vrot.lane.b32.xlu0 %v2894_v63, %s2705_s27 }
  0xa9   : > { %1494 = vrot.lane.b32.xlu1 %v2772_v13, %s2706_s28  ;;  %2158 = vmatpush1.bf16.msra.mxu0 %v1245_v10 }
  0xaa   : > { %v727_v55 = vpop.permute.xlu0 %726  ;;  %v729_v14 = vpop.permute.xlu1 %728 }
  0xab   : > { %v746_v27 = vsel %vm736_vm10, %v727_v55, %v729_v14 }
  0xac   : > { %1496 = vrot.lane.b32.xlu0 %v2642_v62, %s2706_s28  ;;  %2029 = vmatprep.subr.bf16.mxu1 %v746_v27 }
  0xad   : > { %1492 = vrot.lane.b32.xlu1 %v2778_v16, %s2706_s28 }
  0xae   : > { %v725_v24 = vpop.permute.xlu0 %724  ;;  %v1229_v48 = vpop.permute.xlu1 %1228 }
  0xaf   : > { %v745_v63 = vsel %vm736_vm10, %v725_v24, %v727_v55 }
  0xb0   : > { %932 = vrot.lane.b32.xlu0 %v2904_v8, %s2705_s27  ;;  %2030 = vmatpush1.bf16.msra.mxu1 %v745_v63 }
  0xb1   : > { %934 = vrot.lane.b32.xlu1 %v2896_v0, %s2705_s27 }
  0xb2   : > { %v1231_v25 = vpop.permute.xlu0 %1230  ;;  %v1227_v28 = vpop.permute.xlu1 %1226 }
  0xb3   : > { %v1248_v29 = vsel %vm1238_vm11, %v1229_v48, %v1231_v25  ;;  %v1247_v7 = vsel %vm1238_vm11, %v1227_v28, %v1229_v48  ;;  %v2645_v48 = vld [vmem:[%s2749_s20 + $0x68] ss:$12 sps:$4 sm:$0xff]  }
  0xb4   : > { %2159 = vmatprep.subr.bf16.mxu0 %v1248_v29  ;;  %930 = vrot.lane.b32.xlu0 %v2926_v22, %s2705_s27 }
  0xb5   : > { %1500 = vrot.lane.b32.xlu1 %v2793_v21, %s2706_s28  ;;  %2160 = vmatpush1.bf16.msra.mxu0 %v1247_v7 }
  0xb6   : > { %v733_v8 = vpop.permute.xlu0 %732  ;;  %v735_v34 = vpop.permute.xlu1 %734 }
  0xb7   : > { %v748_v9 = vsel %vm736_vm10, %v733_v8, %v735_v34  ;;  %v2646_v34 = vld [vmem:[%s2749_s20 + $0x80] ss:$12 sps:$4 sm:$0xff]  }
  0xb8   : > { %1502 = vrot.lane.b32.xlu0 %v2643_v11, %s2706_s28  ;;  %2031 = vmatprep.subr.bf16.mxu1 %v748_v9 }
  0xb9   : > { %1498 = vrot.lane.b32.xlu1 %v2815_v30, %s2706_s28 }
  0xba   : > { %v731_v0 = vpop.permute.xlu0 %730  ;;  %v1235_v35 = vpop.permute.xlu1 %1234 }
  0xbb   : > { %v747_v22 = vsel %vm736_vm10, %v731_v0, %v733_v8  ;;  %v2647_v0 = vld [vmem:[%s2749_s20 + $0x8] ss:$12 sps:$4 sm:$0xff]  }
  0xbc   : > { %938 = vrot.lane.b32.xlu0 %v2951_v36, %s2705_s27  ;;  %2032 = vmatpush1.bf16.msra.mxu1 %v747_v22 }
  0xbd   : > { %940 = vrot.lane.b32.xlu1 %v2919_v15, %s2705_s27 }
  0xbe   : > { %v1237_v49 = vpop.permute.xlu0 %1236  ;;  %v1233_v4 = vpop.permute.xlu1 %1232 }
  0xbf   : > { %v1250_v39 = vsel %vm1238_vm11, %v1235_v35, %v1237_v49  ;;  %v1249_v19 = vsel %vm1238_vm11, %v1233_v4, %v1235_v35 }
  0xc0   : > { %2161 = vmatprep.subr.bf16.mxu0 %v1250_v39  ;;  %936 = vrot.lane.b32.xlu0 %v2967_v46, %s2705_s27 }
  0xc1   : > { %1506 = vrot.lane.b32.xlu1 %v2865_v50, %s2706_s28  ;;  %2162 = vmatpush1.bf16.msra.mxu0 %v1249_v19 }
  0xc2   : > { %v814_v36 = vpop.permute.xlu1 %813  ;;  %v812_v57 = vpop.permute.xlu0 %811 }
  0xc3   : > { %v847_v15 = vsel %vm845_vm12, %v812_v57, %v814_v36 }
  0xc4   : > { %1508 = vrot.lane.b32.xlu0 %v2644_v20, %s2706_s28  ;;  %2033 = vmatprep.subr.bf16.mxu1 %v847_v15  ;;  %v2648_v20 = vld [vmem:[%s2749_s20 + $0x20] ss:$12 sps:$4 sm:$0xff]   ;;  %v2658_v15 = vld [vmem:[%s3556_s1 + $0x14] ss:$28 sps:$4 sm:$0xff]  }
  0xc5   : > { %1504 = vrot.lane.b32.xlu1 %v2898_v1, %s2706_s28  ;;  %2187 = vmatprep.mubr.bf16.mxu0 %v2658_v15 }
  0xc6   : > { %v810_v10 = vpop.permute.xlu0 %809  ;;  %v1314_v62 = vpop.permute.xlu1 %1313 }
  0xc7   : > { %v846_v46 = vsel %vm845_vm12, %v810_v10, %v812_v57 }
  0xc8   : > { %944 = vrot.lane.b32.xlu0 %v2959_v41, %s2705_s27  ;;  %2034 = vmatpush1.bf16.msra.mxu1 %v846_v46  ;;  %v2650_v46 = vld [vmem:[%s3556_s1] ss:$28 sps:$4 sm:$0xff]  }
  0xc9   : > { %946 = vrot.lane.b32.xlu1 %v2939_v26, %s2705_s27 }
  0xca   : > { %v1316_v55 = vpop.permute.xlu0 %1315  ;;  %v1312_v14 = vpop.permute.xlu1 %1311 }
  0xcb   : > { %v1349_v27 = vsel %vm1347_vm13, %v1314_v62, %v1316_v55  ;;  %v1348_v24 = vsel %vm1347_vm13, %v1312_v14, %v1314_v62 }
  0xcc   : > { %2163 = vmatprep.subr.bf16.mxu0 %v1349_v27  ;;  %942 = vrot.lane.b32.xlu0 %v2974_v51, %s2705_s27 }
  0xcd   : > { %1512 = vrot.lane.b32.xlu1 %v2983_v53, %s2706_s28  ;;  %2164 = vmatpush1.bf16.msra.mxu0 %v1348_v24 }
  0xce   : > { %v818_v41 = vpop.permute.xlu0 %817  ;;  %v820_v63 = vpop.permute.xlu1 %819 }
  0xcf   : > { %v849_v25 = vsel %vm845_vm12, %v818_v41, %v820_v63 }
  0xd0   : > { %1514 = vrot.lane.b32.xlu0 %v2645_v48, %s2706_s28  ;;  %2035 = vmatprep.subr.bf16.mxu1 %v849_v25 }
  0xd1   : > { %1510 = vrot.lane.b32.xlu1 %v2997_v59, %s2706_s28 }
  0xd2   : > { %v816_v26 = vpop.permute.xlu0 %815  ;;  %v1320_v28 = vpop.permute.xlu1 %1319 }
  0xd3   : > { %v848_v51 = vsel %vm845_vm12, %v816_v26, %v818_v41  ;;  %v2653_v41 = vld [vmem:[%s2749_s20 + $0x50] ss:$12 sps:$4 sm:$0xff]  }
  0xd4   : > { %950 = vrot.lane.b32.xlu0 %v2977_v52, %s2705_s27  ;;  %2036 = vmatpush1.bf16.msra.mxu1 %v848_v51 }
  0xd5   : > { %952 = vrot.lane.b32.xlu1 %v2953_v38, %s2705_s27 }
  0xd6   : > { %v1322_v29 = vpop.permute.xlu0 %1321  ;;  %v1318_v7 = vpop.permute.xlu1 %1317 }
  0xd7   : > { %v1351_v11 = vsel %vm1347_vm13, %v1320_v28, %v1322_v29  ;;  %v1350_v8 = vsel %vm1347_vm13, %v1318_v7, %v1320_v28 }
  0xd8   : > { %948 = vrot.lane.b32.xlu0 %v2991_v58, %s2705_s27  ;;  %2165 = vmatprep.subr.bf16.mxu0 %v1351_v11 }
  0xd9   : > { %1518 = vrot.lane.b32.xlu1 %v3020_v54, %s2706_s28  ;;  %2166 = vmatpush1.bf16.msra.mxu0 %v1350_v8  ;;  %v2654_v8 = vld [vmem:[%s2749_s20 + $0x68] ss:$12 sps:$4 sm:$0xff]  }
  0xda   : > { %v824_v52 = vpop.permute.xlu0 %823  ;;  %v826_v9 = vpop.permute.xlu1 %825 }
  0xdb   : > { %v851_v38 = vsel %vm845_vm12, %v824_v52, %v826_v9 }
  0xdc   : > { %1520 = vrot.lane.b32.xlu0 %v2646_v34, %s2706_s28  ;;  %2037 = vmatprep.subr.bf16.mxu1 %v851_v38 }
  0xdd   : > { %1516 = vrot.lane.b32.xlu1 %v3030_v17, %s2706_s28 }
  0xde   : > { %v822_v35 = vpop.permute.xlu0 %821  ;;  %v1326_v58 = vpop.permute.xlu1 %1325 }
  0xdf   : > { %v850_v22 = vsel %vm845_vm12, %v822_v35, %v824_v52 }
  0xe0   : > { %1095 = vrot.lane.b32.xlu0 %v2759_v5, %s2707_s29  ;;  %2038 = vmatpush1.bf16.msra.mxu1 %v850_v22 }
  0xe1   : > { %1097 = vrot.lane.b32.xlu1 %v2647_v0, %s2707_s29 }
  0xe2   : > { %v1328_v49 = vpop.permute.xlu0 %1327  ;;  %v1324_v4 = vpop.permute.xlu1 %1323 }
  0xe3   : > { %v1353_v39 = vsel %vm1347_vm13, %v1326_v58, %v1328_v49  ;;  %v1352_v19 = vsel %vm1347_vm13, %v1324_v4, %v1326_v58  ;;  %v2661_v49 = vld [vmem:[%s3556_s1 + $0x38] ss:$28 sps:$4 sm:$0xff]  }
  0xe4   : > { %1093 = vrot.lane.b32.xlu0 %v2763_v6, %s2707_s29  ;;  %2167 = vmatprep.subr.bf16.mxu0 %v1353_v39  ;;  %v2649_v6 = vld [vmem:[%s2749_s20 + $0x38] ss:$12 sps:$4 sm:$0xff]  }
  0xe5   : > { %1101 = vrot.lane.b32.xlu1 %v2772_v13, %s2707_s29  ;;  %2168 = vmatpush1.bf16.msra.mxu0 %v1352_v19 }
  0xe6   : > { %v830_v5 = vpop.permute.xlu0 %829  ;;  %v832_v36 = vpop.permute.xlu1 %831 }
  0xe7   : > { %v853_v57 = vsel %vm845_vm12, %v830_v5, %v832_v36 }
  0xe8   : > { %1103 = vrot.lane.b32.xlu0 %v2648_v20, %s2707_s29  ;;  %2039 = vmatprep.subr.bf16.mxu1 %v853_v57 }
  0xe9   : > { %1099 = vrot.lane.b32.xlu1 %v2778_v16, %s2707_s29 }
  0xea   : > { %v828_v10 = vpop.permute.xlu0 %827  ;;  %v1332_v62 = vpop.permute.xlu1 %1331 }
  0xeb   : > { %v852_v13 = vsel %vm845_vm12, %v828_v10, %v830_v5 }
  0xec   : > { %1107 = vrot.lane.b32.xlu0 %v2793_v21, %s2707_s29  ;;  %2040 = vmatpush1.bf16.msra.mxu1 %v852_v13 }
  0xed   : > { %1109 = vrot.lane.b32.xlu1 %v2649_v6, %s2707_s29 }
  0xee   : > { %v1334_v55 = vpop.permute.xlu0 %1333  ;;  %v1330_v14 = vpop.permute.xlu1 %1329 }
  0xef   : > { %v1355_v16 = vsel %vm1347_vm13, %v1332_v62, %v1334_v55  ;;  %v1354_v27 = vsel %vm1347_vm13, %v1330_v14, %v1332_v62  ;;  %2042 = vmatmul.mubr.bf16.vlgmr.msra.gmra.mrb[0].mxu1 %v2650_v46 }
  0xf0   : > { %1105 = vrot.lane.b32.xlu0 %v2815_v30, %s2707_s29  ;;  %2169 = vmatprep.subr.bf16.mxu0 %v1355_v16 }
  0xf1   : > { %1597 = vrot.lane.b32.xlu1 %v3066_v56, %s2708_s8  ;;  %2170 = vmatpush1.bf16.msra.mxu0 %v1354_v27  ;;  %v2709_v27 = vmov 0  }
  0xf2   : > { %v836_v21 = vpop.permute.xlu0 %835  ;;  %v838_v24 = vpop.permute.xlu1 %837  ;;  %2621 = vset.pattern.permute.xlu0 %v2709_v27  ;;  %2622 = vset.pattern.permute.xlu1 %v2709_v27 }
  0xf3   : > { %v855_v48 = vsel %vm845_vm12, %v836_v21, %v838_v24 }
  0xf4   : > { %1599 = vrot.lane.b32.xlu0 %v3064_v47, %s2708_s8  ;;  %2082 = vmatprep.subr.bf16.mxu1 %v855_v48 }
  0xf5   : > { %1595 = vrot.lane.b32.xlu1 %v3072_v3, %s2708_s8 }
  0xf6   : > { %v834_v63 = vpop.permute.xlu0 %833  ;;  %v1338_v30 = vpop.permute.xlu1 %1337 }
  0xf7   : > { %v854_v25 = vsel %vm845_vm12, %v834_v63, %v836_v21 }
  0xf8   : > { %1113 = vrot.lane.b32.xlu0 %v2865_v50, %s2707_s29  ;;  %2083 = vmatpush1.bf16.msra.mxu1 %v854_v25 }
  0xf9   : > { %1115 = vrot.lane.b32.xlu1 %v2653_v41, %s2707_s29 }
  0xfa   : > { %v1340_v26 = vpop.permute.xlu0 %1339  ;;  %v1336_v28 = vpop.permute.xlu1 %1335 }
  0xfb   : > { %v1357_v51 = vsel %vm1347_vm13, %v1338_v30, %v1340_v26  ;;  %v1356_v29 = vsel %vm1347_vm13, %v1336_v28, %v1338_v30 }
  0xfc   : > { %1111 = vrot.lane.b32.xlu0 %v2898_v1, %s2707_s29  ;;  %2171 = vmatprep.subr.bf16.mxu0 %v1357_v51 }
  0xfd   : > { %1603 = vrot.lane.b32.xlu1 %v2847_v44, %s2708_s8  ;;  %2172 = vmatpush1.bf16.msra.mxu0 %v1356_v29 }
  0xfe   : > { %v842_v7 = vpop.permute.xlu0 %841  ;;  %v844_v50 = vpop.permute.xlu1 %843 }
  0xff   : > { %v857_v11 = vsel %vm845_vm12, %v842_v7, %v844_v50 }
 0x100   : > { %1605 = vrot.lane.b32.xlu0 %v3094_v12, %s2708_s8  ;;  %2084 = vmatprep.subr.bf16.mxu1 %v857_v11  ;;  %v1808_v11 = vld [vmem:[%s3557_s2] sm:$0xff] }
 0x101   : > { %1601 = vrot.lane.b32.xlu1 %v2849_v45, %s2708_s8 }
 0x102   : > { %v840_v34 = vpop.permute.xlu0 %839  ;;  %v1344_v52 = vpop.permute.xlu1 %1343 }
 0x103   : > { %v856_v1 = vsel %vm845_vm12, %v840_v34, %v842_v7 }
 0x104   : > { %1119 = vrot.lane.b32.xlu0 %v2983_v53, %s2707_s29  ;;  %2085 = vmatpush1.bf16.msra.mxu1 %v856_v1  ;;  %v2659_v53 = vld [vmem:[%s3556_s1 + $0x3c] ss:$28 sps:$4 sm:$0xff]  }
 0x105   : > { %1121 = vrot.lane.b32.xlu1 %v2654_v8, %s2707_s29  ;;  %2051 = vmatprep.mubr.bf16.mxu1 %v2659_v53  ;;  %v1809_v8 = vld [vmem:[%s3557_s2 + $0x8] sm:$0xff]  ;;  %v1812_v53 = vld [vmem:[%s3557_s2 + $0x20] sm:$0xff] }
 0x106   : > { %v1346_v9 = vpop.permute.xlu0 %1345  ;;  %v1342_v38 = vpop.permute.xlu1 %1341  ;;  %2052 = vmatmul.mubr.bf16.gmra.mrb[4].mxu1 %v2661_v49 }
 0x107   : > { %v1359_v0 = vsel %vm1347_vm13, %v1344_v52, %v1346_v9  ;;  %v1358_v35 = vsel %vm1347_vm13, %v1342_v38, %v1344_v52  ;;  %v1810_v52 = vld [vmem:[%s3557_s2 + $0x10] sm:$0xff]  ;;  %v1811_v38 = vld [vmem:[%s3557_s2 + $0x18] sm:$0xff] }
 0x108   : > { %1117 = vrot.lane.b32.xlu0 %v2997_v59, %s2707_s29  ;;  %2173 = vmatprep.subr.bf16.mxu0 %v1359_v0 }
 0x109   : > { %1609 = vrot.lane.b32.xlu1 %v2817_v31, %s2708_s8  ;;  %2174 = vmatpush1.bf16.msra.mxu0 %v1358_v35  ;;  %v2655_v31 = vld [vmem:[%s2749_s20 + $0x80] ss:$12 sps:$4 sm:$0xff]  }
 0x10a   : > { %v921_v58 = vpop.permute.xlu0 %920  ;;  %v923_v22 = vpop.permute.xlu1 %922 }
 0x10b   : > { %v956_v4 = vsel %vm954_vm14, %v921_v58, %v923_v22  ;;  %v1813_v22 = vld [vmem:[%s3557_s2 + $0x28] sm:$0xff] }
 0x10c   : > { %1611 = vrot.lane.b32.xlu0 %v2844_v42, %s2708_s8  ;;  %2086 = vmatprep.subr.bf16.mxu1 %v956_v4  ;;  %v2665_v42 = vld [vmem:[%s3556_s1 + $0x74] ss:$28 sps:$4 sm:$0xff]  }
 0x10d   : > { %1607 = vrot.lane.b32.xlu1 %v2830_v37, %s2708_s8  ;;  %v2667_v37 = vld [vmem:[%s3556_s1 + $0x70] ss:$28 sps:$4 sm:$0xff]   ;;  %2061 = vmatprep.mubr.bf16.mxu1 %v2665_v42 }
 0x10e   : > { %v919_v59 = vpop.permute.xlu0 %918  ;;  %2062 = vmatmul.mubr.bf16.gmra.mrb[8].mxu1 %v2667_v37 }
 0x10f   : > { %v955_v39 = vsel %vm954_vm14, %v919_v59, %v921_v58  ;;  %v1489_v19 = vpop.permute.xlu1 %1488 }
 0x110   : > { %1125 = vrot.lane.b32.xlu0 %v3020_v54, %s2707_s29  ;;  %2087 = vmatpush1.bf16.msra.mxu1 %v955_v39 }
 0x111   : > { %1127 = vrot.lane.b32.xlu1 %v2655_v31, %s2707_s29  ;;  %v1814_v31 = vld [vmem:[%s3557_s2 + $0x30] sm:$0xff] }
 0x112   : > { %v1491_v20 = vpop.permute.xlu0 %1490 }
 0x113   : > { %v1487_v5 = vpop.permute.xlu1 %1486  ;;  %v1524_v36 = vsel %vm1522_vm15, %v1489_v19, %v1491_v20 }
 0x114   : > { %1123 = vrot.lane.b32.xlu0 %v3030_v17, %s2707_s29  ;;  %2175 = vmatprep.subr.bf16.mxu0 %v1524_v36  ;;  %v1523_v54 = vsel %vm1522_vm15, %v1487_v5, %v1489_v19  ;;  %v2671_v17 = vld [vmem:[%s3556_s1 + $0xac] ss:$28 sps:$4 sm:$0xff]   ;;  %v1815_v19 = vld [vmem:[%s3557_s2 + $0x38] sm:$0xff]  ;;  %s2602_s29 = smul.u32 80, %s3571_s16 }
 0x115   : > { %1615 = vrot.lane.b32.xlu1 %v2924_v18, %s2708_s8  ;;  %2176 = vmatpush1.bf16.msra.mxu0 %v1523_v54  ;;  %v2673_v18 = vld [vmem:[%s3556_s1 + $0xa8] ss:$28 sps:$4 sm:$0xff]   ;;  %v2656_v36 = vld [vmem:[%s3556_s1 + $0x10] ss:$28 sps:$4 sm:$0xff]  }
 0x116   : > { %v927_v57 = vpop.permute.xlu0 %926  ;;  %2071 = vmatprep.mubr.bf16.mxu1 %v2671_v17  ;;  %v2662_v54 = vld [vmem:[%s3556_s1 + $0x4c] ss:$28 sps:$4 sm:$0xff]   ;;  %s3536_s6 = scalar_lea.vmem %s3558_s3, %s2602_s29 }
 0x117   : > { %v929_v15 = vpop.permute.xlu1 %928  ;;  %2072 = vmatmul.mubr.bf16.gmra.mrb[12].mxu1 %v2673_v18 }
 0x118   : > { %1617 = vrot.lane.b32.xlu0 %v2965_v43, %s2708_s8  ;;  %v958_v6 = vsel %vm954_vm14, %v927_v57, %v929_v15 }
 0x119   : > { %1613 = vrot.lane.b32.xlu1 %v2956_v40, %s2708_s8  ;;  %2088 = vmatprep.subr.bf16.mxu1 %v958_v6 }
 0x11a   : > { %v925_v10 = vpop.permute.xlu0 %924 }
 0x11b   : > { %v957_v62 = vsel %vm954_vm14, %v925_v10, %v927_v57  ;;  %v1495_v13 = vpop.permute.xlu1 %1494 }
 0x11c   : > { %1204 = vrot.lane.b32.xlu0 %v3066_v56, %s2702_s22  ;;  %2089 = vmatpush1.bf16.msra.mxu1 %v957_v62  ;;  %v2679_v56 = vld [vmem:[%s3556_s1 + $0xc] ss:$28 sps:$4 sm:$0xff]  }
 0x11d   : > { %1206 = vrot.lane.b32.xlu1 %v3064_v47, %s2702_s22  ;;  %2114 = vmatprep.mubr.bf16.mxu1 %v2679_v56  ;;  %v2664_v62 = vld [vmem:[%s3556_s1 + $0x48] ss:$28 sps:$4 sm:$0xff]  }
 0x11e   : > { %v1497_v40 = vpop.permute.xlu0 %1496 }
 0x11f   : > { %v1493_v43 = vpop.permute.xlu1 %1492  ;;  %v1526_v46 = vsel %vm1522_vm15, %v1495_v13, %v1497_v40 }
 0x120   : > { %1202 = vrot.lane.b32.xlu0 %v3072_v3, %s2702_s22  ;;  %2177 = vmatprep.subr.bf16.mxu0 %v1526_v46  ;;  %v1525_v55 = vsel %vm1522_vm15, %v1493_v43, %v1495_v13  ;;  %v2668_v13 = vld [vmem:[%s3556_s1 + $0x84] ss:$28 sps:$4 sm:$0xff]  }
 0x121   : > { %1621 = vrot.lane.b32.xlu1 %v2999_v60, %s2708_s8  ;;  %2178 = vmatpush1.bf16.msra.mxu0 %v1525_v55 }
 0x122   : > { %v933_v47 = vpop.permute.xlu0 %932 }
 0x123   : > { %v935_v14 = vpop.permute.xlu1 %934 }
 0x124   : > { %1623 = vrot.lane.b32.xlu0 %v3012_v61, %s2708_s8  ;;  %v960_v16 = vsel %vm954_vm14, %v933_v47, %v935_v14 }
 0x125   : > { %1619 = vrot.lane.b32.xlu1 %v3014_v2, %s2708_s8  ;;  %2090 = vmatprep.subr.bf16.mxu1 %v960_v16  ;;  %v2670_v16 = vld [vmem:[%s3556_s1 + $0x80] ss:$28 sps:$4 sm:$0xff]  }
 0x126   : > { %v931_v3 = vpop.permute.xlu0 %930 }
 0x127   : > { %v959_v60 = vsel %vm954_vm14, %v931_v3, %v933_v47  ;;  %v1501_v21 = vpop.permute.xlu1 %1500  ;;  %v2674_v3 = vld [vmem:[%s3556_s1 + $0xbc] ss:$28 sps:$4 sm:$0xff]  }
 0x128   : > { %1210 = vrot.lane.b32.xlu0 %v2847_v44, %s2702_s22  ;;  %2091 = vmatpush1.bf16.msra.mxu1 %v959_v60 }
 0x129   : > { %1212 = vrot.lane.b32.xlu1 %v3094_v12, %s2702_s22 }
 0x12a   : > { %v1503_v61 = vpop.permute.xlu0 %1502 }
 0x12b   : > { %v1499_v24 = vpop.permute.xlu1 %1498  ;;  %v1528_v2 = vsel %vm1522_vm15, %v1501_v21, %v1503_v61 }
 0x12c   : > { %1208 = vrot.lane.b32.xlu0 %v2849_v45, %s2702_s22  ;;  %2179 = vmatprep.subr.bf16.mxu0 %v1528_v2  ;;  %v1527_v48 = vsel %vm1522_vm15, %v1499_v24, %v1501_v21 }
 0x12d   : > { %1627 = vrot.lane.b32.xlu1 %v3032_v23, %s2708_s8  ;;  %2180 = vmatpush1.bf16.msra.mxu0 %v1527_v48 }
 0x12e   : > { %v939_v41 = vpop.permute.xlu0 %938 }
 0x12f   : > { %v941_v44 = vpop.permute.xlu1 %940 }
 0x130   : > { %1629 = vrot.lane.b32.xlu0 %v3046_v32, %s2708_s8  ;;  %v962_v12 = vsel %vm954_vm14, %v939_v41, %v941_v44  ;;  %v2676_v44 = vld [vmem:[%s3556_s1 + $0xb8] ss:$28 sps:$4 sm:$0xff]  }
 0x131   : > { %1625 = vrot.lane.b32.xlu1 %v3048_v33, %s2708_s8  ;;  %2092 = vmatprep.subr.bf16.mxu1 %v962_v12 }
 0x132   : > { %v937_v63 = vpop.permute.xlu0 %936 }
 0x133   : > { %v961_v45 = vsel %vm954_vm14, %v937_v63, %v939_v41  ;;  %v1507_v30 = vpop.permute.xlu1 %1506 }
 0x134   : > { %2093 = vmatpush1.bf16.msra.mxu1 %v961_v45  ;;  %1818 = vperm.xlu0 %2621, %v1808_v11  }
 0x135   : > { %1823 = vperm.xlu1 %2622, %v1809_v8  }
 0x136   : > { %v1509_v25 = vpop.permute.xlu0 %1508 }
 0x137   : > { %v1505_v26 = vpop.permute.xlu1 %1504  ;;  %v1530_v23 = vsel %vm1522_vm15, %v1507_v30, %v1509_v25 }
 0x138   : > { %2181 = vmatprep.subr.bf16.mxu0 %v1530_v23  ;;  %v1529_v28 = vsel %vm1522_vm15, %v1505_v26, %v1507_v30  ;;  %1833 = vperm.xlu0 %2621, %v1811_v38  }
 0x139   : > { %2182 = vmatpush1.bf16.msra.mxu0 %v1529_v28  ;;  %1828 = vperm.xlu1 %2622, %v1810_v52  }
 0x13a   : > { %v945_v32 = vpop.permute.xlu0 %944 }
 0x13b   : > { %v947_v51 = vpop.permute.xlu1 %946 }
 0x13c   : > { %v964_v29 = vsel %vm954_vm14, %v945_v32, %v947_v51  ;;  %1843 = vperm.xlu0 %2621, %v1813_v22  }
 0x13d   : > { %2094 = vmatprep.subr.bf16.mxu1 %v964_v29  ;;  %1838 = vperm.xlu1 %2622, %v1812_v53  }
 0x13e   : > { %v943_v33 = vpop.permute.xlu0 %942 }
 0x13f   : > { %v963_v7 = vsel %vm954_vm14, %v943_v33, %v945_v32  ;;  %v1513_v50 = vpop.permute.xlu1 %1512 }
 0x140   : > { %2095 = vmatpush1.bf16.msra.mxu1 %v963_v7  ;;  %1853 = vperm.xlu0 %2621, %v1815_v19  }
 0x141   : > { %1848 = vperm.xlu1 %2622, %v1814_v31  }
 0x142   : > { %v1515_v34 = vpop.permute.xlu0 %1514 }
 0x143   : > { %v1511_v1 = vpop.permute.xlu1 %1510  ;;  %v1532_v9 = vsel %vm1522_vm15, %v1513_v50, %v1515_v34 }
 0x144   : > { %2183 = vmatprep.subr.bf16.mxu0 %v1532_v9  ;;  %v1531_v0 = vsel %vm1522_vm15, %v1511_v1, %v1513_v50 }
 0x145   : > { %2184 = vmatpush1.bf16.msra.mxu0 %v1531_v0 }
 0x146   : > { %v951_v35 = vpop.permute.xlu0 %950 }
 0x147   : > { %v953_v58 = vpop.permute.xlu1 %952 }
 0x148   : > { %v966_v49 = vsel %vm954_vm14, %v951_v35, %v953_v58 }
 0x149   : > { %2096 = vmatprep.subr.bf16.mxu1 %v966_v49 }
 0x14a   : > { %v949_v4 = vpop.permute.xlu0 %948 }
 0x14b   : > { %v965_v59 = vsel %vm954_vm14, %v949_v4, %v951_v35  ;;  %v1519_v39 = vpop.permute.xlu1 %1518 }
 0x14c   : > { %2097 = vmatpush1.bf16.msra.mxu1 %v965_v59 }
 0x14e   : > { %v1521_v42 = vpop.permute.xlu0 %1520 }
 0x14f   : > { %v1517_v20 = vpop.permute.xlu1 %1516  ;;  %v1534_v37 = vsel %vm1522_vm15, %v1519_v39, %v1521_v42 }
 0x150   : > { %2185 = vmatprep.subr.bf16.mxu0 %v1534_v37  ;;  %v1533_v5 = vsel %vm1522_vm15, %v1517_v20, %v1519_v39 }
 0x151   : > { %2186 = vmatpush1.bf16.msra.mxu0 %v1533_v5 }
 0x152   : > { %v1096_v57 = vpop.permute.xlu0 %1095 }
 0x153   : > { %v1098_v15 = vpop.permute.xlu1 %1097 }
 0x154   : > { %v1131_v6 = vsel %vm1129_vm0, %v1096_v57, %v1098_v15  ;;  %2188 = vmatmul.mubr.bf16.vlgmr.msra.gmra.mrb[0].mxu0 %v2656_v36 }
 0x155   : > { %2098 = vmatprep.subr.bf16.mxu1 %v1131_v6  ;;  %2197 = vmatprep.mubr.bf16.mxu0 %v2662_v54 }
 0x156   : > { %v1094_v17 = vpop.permute.xlu0 %1093 }
 0x157   : > { %v1130_v10 = vsel %vm1129_vm0, %v1094_v17, %v1096_v57  ;;  %v1102_v18 = vpop.permute.xlu1 %1101 }
 0x158   : > { %2099 = vmatpush1.bf16.msra.mxu1 %v1130_v10 }
 0x15a   : > { %v1104_v40 = vpop.permute.xlu0 %1103 }
 0x15b   : > { %v1100_v43 = vpop.permute.xlu1 %1099  ;;  %v1133_v46 = vsel %vm1129_vm0, %v1102_v18, %v1104_v40  ;;  %v2677_v40 = vld [vmem:[%s3556_s1 + $0x8] ss:$28 sps:$4 sm:$0xff]  }
 0x15c   : > { %v1132_v55 = vsel %vm1129_vm0, %v1100_v43, %v1102_v18  ;;  %2100 = vmatprep.subr.bf16.mxu1 %v1133_v46  ;;  %2198 = vmatmul.mubr.bf16.gmra.mrb[4].mxu0 %v2664_v62  ;;  %v2681_v43 = vld [vmem:[%s3556_s1 + $0x44] ss:$28 sps:$4 sm:$0xff]  }
 0x15d   : > { %2101 = vmatpush1.bf16.msra.mxu1 %v1132_v55  ;;  %2207 = vmatprep.mubr.bf16.mxu0 %v2668_v13 }
 0x15e   : > { %v1108_v56 = vpop.permute.xlu0 %1107 }
 0x15f   : > { %v1110_v47 = vpop.permute.xlu1 %1109 }
 0x160   : > { %v1135_v14 = vsel %vm1129_vm0, %v1108_v56, %v1110_v47 }
 0x161   : > { %2102 = vmatprep.subr.bf16.mxu1 %v1135_v14  ;;  %v2680_v14 = vld [vmem:[%s3556_s1 + $0x18] ss:$28 sps:$4 sm:$0xff]  }
 0x162   : > { %v1106_v60 = vpop.permute.xlu0 %1105 }
 0x163   : > { %v1134_v21 = vsel %vm1129_vm0, %v1106_v60, %v1108_v56  ;;  %v1598_v61 = vpop.permute.xlu1 %1597  ;;  %v2684_v60 = vld [vmem:[%s3556_s1 + $0x50] ss:$28 sps:$4 sm:$0xff]  }
 0x164   : > { %2103 = vmatpush1.bf16.msra.mxu1 %v1134_v21  ;;  %2208 = vmatmul.mubr.bf16.gmra.mrb[8].mxu0 %v2670_v16  ;;  %v2683_v16 = vld [vmem:[%s3556_s1 + $0x40] ss:$28 sps:$4 sm:$0xff]   ;;  %v2687_v21 = vld [vmem:[%s3556_s1 + $0x78] ss:$28 sps:$4 sm:$0xff]  }
 0x165   : > { %2217 = vmatprep.mubr.bf16.mxu0 %v2674_v3  ;;  %v2685_v3 = vld [vmem:[%s3556_s1 + $0x7c] ss:$28 sps:$4 sm:$0xff]  }
 0x166   : > { %v1600_v24 = vpop.permute.xlu0 %1599 }
 0x167   : > { %v1596_v2 = vpop.permute.xlu1 %1595  ;;  %v1633_v48 = vsel %vm1631_vm1, %v1598_v61, %v1600_v24  ;;  %v2688_v24 = vld [vmem:[%s3556_s1 + $0x88] ss:$28 sps:$4 sm:$0xff]  }
 0x168   : > { %v1632_v41 = vsel %vm1631_vm1, %v1596_v2, %v1598_v61  ;;  %2228 = vmatprep.subr.bf16.mxu0 %v1633_v48  ;;  %v2689_v61 = vld [vmem:[%s3556_s1 + $0xb4] ss:$28 sps:$4 sm:$0xff]   ;;  %v2692_v48 = vld [vmem:[%s3556_s1 + $0xc0] ss:$28 sps:$4 sm:$0xff]  }
 0x169   : > { %2229 = vmatpush1.bf16.msra.mxu0 %v1632_v41  ;;  %v2691_v2 = vld [vmem:[%s3556_s1 + $0xb0] ss:$28 sps:$4 sm:$0xff]  }
 0x16a   : > { %v1114_v12 = vpop.permute.xlu0 %1113 }
 0x16b   : > { %v1116_v63 = vpop.permute.xlu1 %1115 }
 0x16c   : > { %v1137_v45 = vsel %vm1129_vm0, %v1114_v12, %v1116_v63  ;;  %2218 = vmatmul.mubr.bf16.gmra.mrb[12].mxu0 %v2676_v44 }
 0x16d   : > { %2104 = vmatprep.subr.bf16.mxu1 %v1137_v45  ;;  %2260 = vmatprep.mubr.bf16.mxu0 %v2709_v27 }
 0x16e   : > { %v1112_v30 = vpop.permute.xlu0 %1111 }
 0x16f   : > { %v1136_v25 = vsel %vm1129_vm0, %v1112_v30, %v1114_v12  ;;  %v1604_v26 = vpop.permute.xlu1 %1603 }
 0x170   : > { %2105 = vmatpush1.bf16.msra.mxu1 %v1136_v25 }
 0x172   : > { %v1606_v23 = vpop.permute.xlu0 %1605 }
 0x173   : > { %v1602_v28 = vpop.permute.xlu1 %1601  ;;  %v1635_v32 = vsel %vm1631_vm1, %v1604_v26, %v1606_v23 }
 0x174   : > { %v1634_v51 = vsel %vm1631_vm1, %v1602_v28, %v1604_v26  ;;  %2230 = vmatprep.subr.bf16.mxu0 %v1635_v32 }
 0x175   : > { %2231 = vmatpush1.bf16.msra.mxu0 %v1634_v51 }
 0x176   : > { %v1120_v29 = vpop.permute.xlu0 %1119 }
 0x177   : > { %v1122_v33 = vpop.permute.xlu1 %1121 }
 0x178   : > { %v1139_v7 = vsel %vm1129_vm0, %v1120_v29, %v1122_v33 }
 0x179   : > { %2106 = vmatprep.subr.bf16.mxu1 %v1139_v7 }
 0x17a   : > { %v1118_v50 = vpop.permute.xlu0 %1117 }
 0x17b   : > { %v1138_v11 = vsel %vm1129_vm0, %v1118_v50, %v1120_v29  ;;  %v1610_v8 = vpop.permute.xlu1 %1609 }
 0x17c   : > { %2107 = vmatpush1.bf16.msra.mxu1 %v1138_v11 }
 0x17e   : > { %v1612_v34 = vpop.permute.xlu0 %1611 }
 0x17f   : > { %v1608_v52 = vpop.permute.xlu1 %1607  ;;  %v1637_v1 = vsel %vm1631_vm1, %v1610_v8, %v1612_v34 }
 0x180   : > { %v1636_v9 = vsel %vm1631_vm1, %v1608_v52, %v1610_v8  ;;  %2232 = vmatprep.subr.bf16.mxu0 %v1637_v1 }
 0x181   : > { %2233 = vmatpush1.bf16.msra.mxu0 %v1636_v9 }
 0x182   : > { %v1126_v38 = vpop.permute.xlu0 %1125 }
 0x183   : > { %v1128_v0 = vpop.permute.xlu1 %1127 }
 0x184   : > { %v1141_v35 = vsel %vm1129_vm0, %v1126_v38, %v1128_v0 }
 0x185   : > { %2108 = vmatprep.subr.bf16.mxu1 %v1141_v35 }
 0x186   : > { %v1124_v53 = vpop.permute.xlu0 %1123 }
 0x187   : > { %v1140_v58 = vsel %vm1129_vm0, %v1124_v53, %v1126_v38  ;;  %v1616_v22 = vpop.permute.xlu1 %1615 }
 0x188   : > { %2109 = vmatpush1.bf16.msra.mxu1 %v1140_v58 }
 0x18a   : > { %v1618_v49 = vpop.permute.xlu0 %1617 }
 0x18b   : > { %v1614_v4 = vpop.permute.xlu1 %1613  ;;  %v1639_v31 = vsel %vm1631_vm1, %v1616_v22, %v1618_v49 }
 0x18c   : > { %v1638_v59 = vsel %vm1631_vm1, %v1614_v4, %v1616_v22  ;;  %2234 = vmatprep.subr.bf16.mxu0 %v1639_v31 }
 0x18d   : > { %2235 = vmatpush1.bf16.msra.mxu0 %v1638_v59 }
 0x18e   : > { %v1205_v39 = vpop.permute.xlu0 %1204 }
 0x18f   : > { %v1207_v19 = vpop.permute.xlu1 %1206 }
 0x190   : > { %v1240_v42 = vsel %vm1238_vm11, %v1205_v39, %v1207_v19 }
 0x191   : > { %2110 = vmatprep.subr.bf16.mxu1 %v1240_v42 }
 0x192   : > { %v1203_v20 = vpop.permute.xlu0 %1202 }
 0x193   : > { %v1239_v37 = vsel %vm1238_vm11, %v1203_v20, %v1205_v39  ;;  %v1622_v5 = vpop.permute.xlu1 %1621 }
 0x194   : > { %2111 = vmatpush1.bf16.msra.mxu1 %v1239_v37 }
 0x196   : > { %v1624_v36 = vpop.permute.xlu0 %1623 }
 0x197   : > { %v1620_v54 = vpop.permute.xlu1 %1619  ;;  %v1641_v57 = vsel %vm1631_vm1, %v1622_v5, %v1624_v36 }
 0x198   : > { %v1640_v15 = vsel %vm1631_vm1, %v1620_v54, %v1622_v5  ;;  %2236 = vmatprep.subr.bf16.mxu0 %v1641_v57 }
 0x199   : > { %2237 = vmatpush1.bf16.msra.mxu0 %v1640_v15 }
 0x19a   : > { %v1211_v6 = vpop.permute.xlu0 %1210 }
 0x19b   : > { %v1213_v17 = vpop.permute.xlu1 %1212 }
 0x19c   : > { %v1242_v10 = vsel %vm1238_vm11, %v1211_v6, %v1213_v17 }
 0x19d   : > { %2112 = vmatprep.subr.bf16.mxu1 %v1242_v10 }
 0x19e   : > { %v1209_v18 = vpop.permute.xlu0 %1208 }
 0x19f   : > { %v1241_v62 = vsel %vm1238_vm11, %v1209_v18, %v1211_v6  ;;  %v1628_v13 = vpop.permute.xlu1 %1627 }
 0x1a0   : > { %2113 = vmatpush1.bf16.msra.mxu1 %v1241_v62 }
 0x1a2   : > { %v1630_v46 = vpop.permute.xlu0 %1629 }
 0x1a3   : > { %v1626_v55 = vpop.permute.xlu1 %1625  ;;  %2115 = vmatmul.mubr.bf16.vlgmr.msra.gmra.mrb[0].mxu1 %v2677_v40  ;;  %v1643_v56 = vsel %vm1631_vm1, %v1628_v13, %v1630_v46 }
 0x1a4   : > { %v1642_v47 = vsel %vm1631_vm1, %v1626_v55, %v1628_v13  ;;  %2238 = vmatprep.subr.bf16.mxu0 %v1643_v56  ;;  %2124 = vmatprep.mubr.bf16.mxu1 %v2681_v43 }
 0x1a5   : > { %2239 = vmatpush1.bf16.msra.mxu0 %v1642_v47 }
 0x1a8   : > { %2531 = vmatmul.mubr.msk.bf16.vlgmr.msra.gmra.mrb[0].mxu0 %vm1347_vm13, %v2680_v14 }
 0x1a9   : > { %2270 = vmatprep.mubr.bf16.mxu0 %v2709_v27 }
 0x1ab   : > { %2125 = vmatmul.mubr.bf16.gmra.mrb[4].mxu1 %v2683_v16 }
 0x1ac   : > { %2134 = vmatprep.mubr.bf16.mxu1 %v2685_v3 }
 0x1b0   : > { %2532 = vmatmul.mubr.msk.bf16.gmra.mrb[4].mxu0 %vm1347_vm13, %v2684_v60 }
 0x1b1   : > { %2280 = vmatprep.mubr.bf16.mxu0 %v2709_v27 }
 0x1b3   : > { %2135 = vmatmul.mubr.bf16.gmra.mrb[8].mxu1 %v2687_v21  ;;  %v1819_v44 = vpop.permute.xlu0 %1818 }
 0x1b4   : > { %2144 = vmatprep.mubr.bf16.mxu1 %v2689_v61  ;;  %v1824_v45 = vpop.permute.xlu1 %1823 }
 0x1b7   : > { %v1834_v9 = vpop.permute.xlu0 %1833 }
 0x1b8   : > { %2533 = vmatmul.mubr.msk.bf16.gmra.mrb[8].mxu0 %vm1347_vm13, %v2688_v24  ;;  %v1829_v34 = vpop.permute.xlu1 %1828 }
 0x1b9   : > { %2290 = vmatprep.mubr.bf16.mxu0 %v2709_v27 }
 0x1bb   : > { %2145 = vmatmul.mubr.bf16.gmra.mrb[12].mxu1 %v2691_v2  ;;  %v1844_v15 = vpop.permute.xlu0 %1843 }
 0x1bc   : > { %v1839_v36 = vpop.permute.xlu1 %1838 }
 0x1bf   : > { %v1854_v61 = vpop.permute.xlu0 %1853 }
 0x1c0   : > { %2534 = vmatmul.mubr.msk.bf16.gmra.mrb[12].mxu0 %vm1347_vm13, %v2692_v48  ;;  %v1849_v3 = vpop.permute.xlu1 %1848 }
 0x276   : > { %v2116_v41 = vpop.f32.mrb[0].mxu1 }
 0x277   : > { %v2118_v12 = vpop.f32.mrb[1].mxu1  ;;  %v2537_v25 = vadd.f32 %v2116_v41, %v1819_v44 }
 0x278   : > { %v2120_v63 = vpop.f32.mrb[2].mxu1  ;;  %v2539_v26 = vadd.f32 %v2118_v12, %v1819_v44 }
 0x279   : > { %v2122_v30 = vpop.f32.mrb[3].mxu1  ;;  %v2541_v23 = vadd.f32 %v2120_v63, %v1824_v45 }
 0x27a   : > { %v2543_v51 = vadd.f32 %v2122_v30, %v1824_v45 }
 0x27b   : > { %v2262_v27 = vpop.f32.mrb[0].mxu0 }
 0x27c   : > { %v2538_v28 = vadd.f32 %v2537_v25, %v2262_v27  ;;  %v2264_v32 = vpop.f32.mrb[1].mxu0 }
 0x27d   : > { %v2540_v29 = vadd.f32 %v2539_v26, %v2264_v32  ;;  %v2266_v33 = vpop.f32.mrb[2].mxu0 }
 0x27e   : > { %2301 = vst [vmem:[%s3536_s6] sm:$0xff] %v2538_v28  ;;  %v2542_v7 = vadd.f32 %v2541_v23, %v2266_v33  ;;  %v2268_v50 = vpop.f32.mrb[3].mxu0  ;;  %v2126_v11 = vpop.f32.mrb[4].mxu1 }
 0x27f   : > { %2302 = vst [vmem:[%s3536_s6 + $0x8] sm:$0xff] %v2540_v29  ;;  %v2544_v8 = vadd.f32 %v2543_v51, %v2268_v50  ;;  %v2128_v52 = vpop.f32.mrb[5].mxu1  ;;  %v2545_v0 = vadd.f32 %v2126_v11, %v1829_v34 }
 0x280   : > { %2303 = vst [vmem:[%s3536_s6 + $0x10] sm:$0xff] %v2542_v7  ;;  %v2130_v1 = vpop.f32.mrb[6].mxu1  ;;  %v2547_v35 = vadd.f32 %v2128_v52, %v1829_v34 }
 0x281   : > { %2304 = vst [vmem:[%s3536_s6 + $0x18] sm:$0xff] %v2544_v8  ;;  %v2132_v38 = vpop.f32.mrb[7].mxu1  ;;  %v2549_v58 = vadd.f32 %v2130_v1, %v1834_v9 }
 0x282   : > { %v2551_v4 = vadd.f32 %v2132_v38, %v1834_v9 }
 0x283   : > { %v2272_v53 = vpop.f32.mrb[4].mxu0 }
 0x284   : > { %v2546_v22 = vadd.f32 %v2545_v0, %v2272_v53  ;;  %v2274_v49 = vpop.f32.mrb[5].mxu0 }
 0x285   : > { %v2548_v31 = vadd.f32 %v2547_v35, %v2274_v49  ;;  %v2276_v59 = vpop.f32.mrb[6].mxu0 }
 0x286   : > { %2305 = vst [vmem:[%s3536_s6 + $0x20] sm:$0xff] %v2546_v22  ;;  %v2550_v39 = vadd.f32 %v2549_v58, %v2276_v59  ;;  %v2278_v19 = vpop.f32.mrb[7].mxu0  ;;  %v2136_v42 = vpop.f32.mrb[8].mxu1 }
 0x287   : > { %2306 = vst [vmem:[%s3536_s6 + $0x28] sm:$0xff] %v2548_v31  ;;  %v2552_v20 = vadd.f32 %v2551_v4, %v2278_v19  ;;  %v2138_v37 = vpop.f32.mrb[9].mxu1  ;;  %v2553_v57 = vadd.f32 %v2136_v42, %v1839_v36 }
 0x288   : > { %2307 = vst [vmem:[%s3536_s6 + $0x30] sm:$0xff] %v2550_v39  ;;  %v2140_v5 = vpop.f32.mrb[10].mxu1  ;;  %v2555_v6 = vadd.f32 %v2138_v37, %v1839_v36 }
 0x289   : > { %2308 = vst [vmem:[%s3536_s6 + $0x38] sm:$0xff] %v2552_v20  ;;  %v2142_v54 = vpop.f32.mrb[11].mxu1  ;;  %v2557_v10 = vadd.f32 %v2140_v5, %v1844_v15 }
 0x28a   : > { %v2559_v13 = vadd.f32 %v2142_v54, %v1844_v15 }
 0x28b   : > { %v2282_v17 = vpop.f32.mrb[8].mxu0 }
 0x28c   : > { %v2554_v18 = vadd.f32 %v2553_v57, %v2282_v17  ;;  %v2284_v62 = vpop.f32.mrb[9].mxu0 }
 0x28d   : > { %v2556_v40 = vadd.f32 %v2555_v6, %v2284_v62  ;;  %v2286_v43 = vpop.f32.mrb[10].mxu0 }
 0x28e   : > { %2309 = vst [vmem:[%s3536_s6 + $0x40] sm:$0xf] %v2554_v18  ;;  %v2558_v46 = vadd.f32 %v2557_v10, %v2286_v43  ;;  %v2146_v55 = vpop.f32.mrb[12].mxu1  ;;  %v2288_v56 = vpop.f32.mrb[11].mxu0 }
 0x28f   : > { %2310 = vst [vmem:[%s3536_s6 + $0x48] sm:$0xf] %v2556_v40  ;;  %v2560_v47 = vadd.f32 %v2559_v13, %v2288_v56  ;;  %v2148_v14 = vpop.f32.mrb[13].mxu1  ;;  %v2561_v21 = vadd.f32 %v2146_v55, %v1849_v3 }
 0x290   : > { %2311 = vst [vmem:[%s210_s10] sm:$0xff] %v2558_v46  ;;  %v2150_v16 = vpop.f32.mrb[14].mxu1  ;;  %v2563_v24 = vadd.f32 %v2148_v14, %v1849_v3 }
 0x291   : > { %2312 = vst [vmem:[%s210_s10 + $0x8] sm:$0xff] %v2560_v47  ;;  %v2152_v60 = vpop.f32.mrb[15].mxu1  ;;  %v2565_v48 = vadd.f32 %v2150_v16, %v1854_v61 }
 0x292   : > { %v2567_v12 = vadd.f32 %v2152_v60, %v1854_v61 }
 0x293   : > { %v2292_v2 = vpop.f32.mrb[12].mxu0 }
 0x294   : > { %v2562_v41 = vadd.f32 %v2561_v21, %v2292_v2  ;;  %v2294_v44 = vpop.f32.mrb[13].mxu0 }
 0x295   : > { %v2564_v63 = vadd.f32 %v2563_v24, %v2294_v44  ;;  %v2296_v45 = vpop.f32.mrb[14].mxu0 }
 0x296   : > { %2313 = vst [vmem:[%s210_s10 + $0x10] sm:$0xff] %v2562_v41  ;;  %v2566_v30 = vadd.f32 %v2565_v48, %v2296_v45  ;;  %v2298_v25 = vpop.f32.mrb[15].mxu0 }
 0x297   : > { %2314 = vst [vmem:[%s210_s10 + $0x18] sm:$0xff] %v2564_v63  ;;  %v2568_v26 = vadd.f32 %v2567_v12, %v2298_v25 }
 0x298   : > { %2315 = vst [vmem:[%s210_s10 + $0x20] sm:$0x3] %v2566_v30 }
 0x299   : > { %2316 = vst [vmem:[%s210_s10 + $0x28] sm:$0x3] %v2568_v26 }
 0x29a PF: > { %s15_s15 = sadd.s32 1, %s2699_s15  }
 0x29b   : > { %p12_p4 = scmp.ge.s32.totalorder %s15_s15, 4  }
 0x29d   :  { %14 = sbr.rel (!%p12_p4) target bundleno = 1 (0x1), region = 74 }

</bundles_post_ra>
